<compile_context>
chip_gen: v7x
topology: tpu7x:2x2x1
jax: 0.10.0
libtpu: 0.0.40
codegen_flags: <defaults>
</compile_context>

<pallas_src>
import functools

import jax
import jax.numpy as jnp
from jax import lax
from jax.experimental import pallas as pl
from jax.experimental.pallas import tpu as pltpu


def _conv_kernel(x_ref, w_ref, b_ref, o_ref, *, KH, KW, IC, TOH, OWp, stride):
    """One (batch n, output-row-tile r) grid step.

    x_ref: (1, 1, s*s*IC, TOH + (KH-1)//s, Wq)  phase-split padded row slab
    w_ref: (OC, KH*KW*IC)                       folded weights (compute dtype)
    b_ref: (OC, 1)                              bias, fp32
    o_ref: (1, OC, TOH*OWp)                     lane-dense output tile
    """
    s = stride
    # Gather the KH*KW taps (unit-stride slices of the pre-split stride phases)
    # and fold them into the contraction dim -> ONE MXU matmul per tile.
    # TODO(synk): derive the KW column taps with pltpu.roll from one full-width
    # load per kh to cut lane-misaligned loads from KH*KW to ~KH.
    pieces = []
    for kh in range(KH):
        dh, ph = kh // s, kh % s
        for kw in range(KW):
            dw, pw = kw // s, kw % s
            phase = ph * s + pw
            pieces.append(
                x_ref[0, 0, pl.ds(phase * IC, IC), pl.ds(dh, TOH), pl.ds(dw, OWp)]
            )  # (IC, TOH, OWp)
    patches = jnp.concatenate(pieces, axis=0)            # (KC, TOH, OWp)
    # OWp % 128 == 0 -> lane-aligned flatten.
    patches = patches.reshape(patches.shape[0], TOH * OWp)

    acc = jnp.dot(w_ref[...], patches, preferred_element_type=jnp.float32)
    acc = acc + b_ref[...]                                # (OC, L) + (OC, 1)
    o_ref[0, :, :] = acc.astype(o_ref.dtype)


def _round_up(x, m):
    return -(-x // m) * m


@functools.partial(
    jax.jit, static_argnames=("stride", "compute_dtype", "row_tile_lanes")
)
def conv_layer_forward(x_nchw, weight_oihw, bias, *, stride,
                       compute_dtype=None, row_tile_lanes=2048):
    """ConvLayer.forward: reflection-pad by kernel_size//2, then Conv2d(stride)."""
    N, IC, H, W = x_nchw.shape
    OC, IC_w, KH, KW = weight_oihw.shape
    assert IC_w == IC
    assert KH == KW, "ConvLayer uses a square kernel (pad = kernel_size // 2)"
    assert bias.shape == (OC,)
    pad = KH // 2
    assert H > pad and W > pad, "ReflectionPad2d requires spatial dims > padding"
    s = int(stride)
    if compute_dtype is None:
        compute_dtype = x_nchw.dtype
    out_dtype = x_nchw.dtype
    cdt = jnp.dtype(compute_dtype).itemsize
    odt = jnp.dtype(out_dtype).itemsize

    # ---- geometry -----------------------------------------------------------
    Hp, Wp = H + 2 * pad, W + 2 * pad
    OH = (Hp - KH) // s + 1
    OW = (Wp - KW) // s + 1
    OWp = max(128, _round_up(OW, 128))            # lane-aligned output width
    W_need = max(Wp, (OWp - 1) * s + KW)
    Wq = _round_up(W_need, s) // s                # per-phase width (unit-stride taps)
    PC = s * s * IC                               # phase * channel
    KC = KH * KW * IC                             # folded contraction dim
    halo = (KH - 1) // s

    # ---- VMEM budget + row-tile pick ----------------------------------------
    try:
        info = pltpu.get_tpu_info()
        vmem_phys = int(getattr(info, "vmem_capacity_bytes", 64 * 2**20))
    except Exception:  # pragma: no cover - fallback if query unavailable
        vmem_phys = 64 * 2**20                    # conservative (v7x per-core)
    vmem_cap = (vmem_phys * 3) // 4               # <=48 MiB v7x, <=96 MiB v5e/v6e

    def vmem_need(toh):
        L = toh * OWp
        in_blk = PC * (toh + halo) * Wq * cdt     # input tile
        w_blk = OC * KC * cdt                     # resident weights
        b_blk = OC * 4
        out_blk = OC * L * odt                    # output tile
        patches = KC * L * cdt                    # im2col temporary
        acc = OC * L * 4                          # fp32 accumulator
        return 2 * (in_blk + w_blk + b_blk + out_blk) + patches + acc + (2 << 20)

    TOH = max(1, row_tile_lanes // OWp)
    if TOH >= 8:
        TOH = (TOH // 8) * 8                      # sublane-aligned row tiles
    TOH = min(TOH, OH)
    while TOH > 1 and vmem_need(TOH) > vmem_cap:  # shrink until it honestly fits
        TOH = max(1, TOH // 2)
    OHp = _round_up(OH, TOH)                      # pad rows instead of requiring TOH | OH
    R = OHp // TOH
    L = TOH * OWp
    TOH_in = TOH + halo
    vmem_limit = int(min(vmem_cap, max(32 * 2**20, (vmem_need(TOH) * 5) // 4)))

    # ---- glue (stays channel-first; fuses under jit) -------------------------
    xp = jnp.pad(x_nchw, ((0, 0), (0, 0), (pad, pad), (pad, pad)), mode="reflect")
    H_need = max(Hp, (OHp - 1) * s + KH)
    Hq = _round_up(H_need, s) // s
    xp = jnp.pad(xp, ((0, 0), (0, 0), (0, Hq * s - Hp), (0, Wq * s - Wp)))
    # Stride-phase split (space-to-depth by s): all in-kernel loads unit-stride.
    xq = xp.reshape(N, IC, Hq, s, Wq, s).transpose(0, 3, 5, 1, 2, 4)
    xq = xq.reshape(N, PC, Hq, Wq)
    # Halo row-tiling: materialize the (KH-1)//s-row overlap per output row
    # tile so each grid step's input block holds only the rows it needs.
    # TODO(synk): a manual pl.ANY + make_async_copy halo pipeline would avoid
    # the ~(1 + halo/TOH)x HBM duplication this wrapper gather introduces.
    ridx = (jnp.arange(R) * TOH)[:, None] + jnp.arange(TOH_in)[None, :]
    xh = jnp.take(xq, ridx.reshape(-1), axis=2).reshape(N, PC, R, TOH_in, Wq)
    xh = xh.transpose(0, 2, 1, 3, 4).astype(compute_dtype)  # (N, R, PC, TOH_in, Wq)

    # (OC, IC, KH, KW) -> (OC, KH, KW, IC) -> (OC, KC); matches tap concat order.
    w2 = jnp.transpose(weight_oihw, (0, 2, 3, 1)).reshape(OC, KC).astype(compute_dtype)
    b2 = bias.reshape(OC, 1).astype(jnp.float32)

    kernel = functools.partial(_conv_kernel, KH=KH, KW=KW, IC=IC,
                               TOH=TOH, OWp=OWp, stride=s)

    # TODO(synk): for very large OC*IC (KC*L im2col temp dominating VMEM), split
    # the contraction into a kh-loop instead of one folded patch matrix.
    out = pl.pallas_call(
        kernel,
        out_shape=jax.ShapeDtypeStruct((N, OC, R * L), out_dtype),
        grid_spec=pltpu.PrefetchScalarGridSpec(
            num_scalar_prefetch=0,
            # batch x output-row-tiles; input is halo-tiled so both axes are
            # cheap to shard across v7x's two TensorCores.
            grid=(N, R),
            in_specs=[
                pl.BlockSpec((1, 1, PC, TOH_in, Wq), lambda n, r: (n, r, 0, 0, 0)),
                pl.BlockSpec((OC, KC), lambda n, r: (0, 0)),
                pl.BlockSpec((OC, 1), lambda n, r: (0, 0)),
            ],
            out_specs=pl.BlockSpec((1, OC, L), lambda n, r: (n, 0, r)),
        ),
        compiler_params=pltpu.CompilerParams(
            dimension_semantics=("parallel", "parallel"),
            vmem_limit_bytes=vmem_limit,
        ),
    )(xh, w2, b2)

    # Cheap reshape (splits the minor dim only), then crop the OH/OW padding.
    out = out.reshape(N, OC, OHp, OWp)[:, :, :OH, :OW]
    return out


def _reference(x_nchw, weight_oihw, bias, stride):
    pad = weight_oihw.shape[-1] // 2
    xp = jnp.pad(x_nchw, ((0, 0), (0, 0), (pad, pad), (pad, pad)), mode="reflect")
    out = lax.conv_general_dilated(
        xp, weight_oihw, (stride, stride), "VALID",
        dimension_numbers=("NCHW", "OIHW", "NCHW"),
    )
    return out + bias[None, :, None, None]


if __name__ == "__main__":
    key = jax.random.PRNGKey(0)
    k1, k2, k3 = jax.random.split(key, 3)

    # ConvLayer(in_channels=4, out_channels=8, kernel_size=3, stride=...) on (2,4,16,16).
    N, IC, H, W = 2, 4, 16, 16
    OC, K = 8, 3

    x = jax.random.normal(k1, (N, IC, H, W), jnp.float32)
    fan_in = IC * K * K
    bound = 1.0 / (fan_in ** 0.5)
    weight = jax.random.uniform(k2, (OC, IC, K, K), jnp.float32, -bound, bound)
    bias = jax.random.uniform(k3, (OC,), jnp.float32, -bound, bound)

    # fp32 path (matches the PyTorch module's numerics), stride 1 and 2.
    for s in (1, 2):
        out = jax.block_until_ready(conv_layer_forward(x, weight, bias, stride=s))
        ref = _reference(x, weight, bias, s)
        assert out.shape == ref.shape, (s, out.shape, ref.shape)
        assert jnp.allclose(out, ref, atol=1e-4, rtol=1e-4), (
            s, float(jnp.max(jnp.abs(out - ref))))

    # Multi-row-tile path (smaller lane target -> R > 1, exercises the halo gather).
    ref1 = _reference(x, weight, bias, 1)
    out_rt = jax.block_until_ready(
        conv_layer_forward(x, weight, bias, stride=1, row_tile_lanes=1024))
    assert jnp.allclose(out_rt, ref1, atol=1e-4, rtol=1e-4), (
        float(jnp.max(jnp.abs(out_rt - ref1))))

    # bf16 MXU-operand path (full-rate on v6e/v7x) with fp32 accumulation.
    out_bf16 = jax.block_until_ready(
        conv_layer_forward(x, weight, bias, stride=1, compute_dtype=jnp.bfloat16))
    assert out_bf16.shape == ref1.shape
    assert jnp.allclose(out_bf16, ref1, atol=5e-2, rtol=5e-2), (
        float(jnp.max(jnp.abs(out_bf16 - ref1))))

    print("KERNEL_OK")
</pallas_src>

<mosaic_0001>
module attributes {stable_mosaic.version = 11 : i64} {
  func.func @_conv_kernel(%arg0: i32, %arg1: i32, %arg2: memref<1x1x4x18x130xf32, #tpu.memory_space<vmem>>, %arg3: memref<8x36xf32, #tpu.memory_space<vmem>>, %arg4: memref<8x1xf32, #tpu.memory_space<vmem>>, %arg5: memref<1x8x2048xf32, #tpu.memory_space<vmem>>) attributes {dimension_semantics = [#tpu.dimension_semantics<parallel>, #tpu.dimension_semantics<parallel>], iteration_bounds = array<i64: 2, 1>, scalar_prefetch = 0 : i64, scratch_operands = 0 : i64, tpu.core_type = #tpu.core_type<tc>, window_params = [{transform_indices = @transform_0, window_bounds = array<i64: 1, 1, 4, 18, 130>}, {pipeline_mode = #tpu.pipeline_mode<synchronous>, transform_indices = @transform_1, window_bounds = array<i64: 8, 36>}, {pipeline_mode = #tpu.pipeline_mode<synchronous>, transform_indices = @transform_2, window_bounds = array<i64: 8, 1>}, {transform_indices = @transform_3, window_bounds = array<i64: 1, 8, 2048>}]} {
    %c0 = arith.constant 0 : index
    %c0_0 = arith.constant 0 : index
    %c0_1 = arith.constant 0 : index
    %c0_2 = arith.constant 0 : index
    %c0_3 = arith.constant 0 : index
    %0 = vector.load %arg2[%c0, %c0_0, %c0_1, %c0_2, %c0_3] : memref<1x1x4x18x130xf32, #tpu.memory_space<vmem>>, vector<1x1x4x16x128xf32>
    %1 = vector.shape_cast %0 : vector<1x1x4x16x128xf32> to vector<4x16x128xf32>
    %c0_4 = arith.constant 0 : index
    %c0_5 = arith.constant 0 : index
    %c0_6 = arith.constant 0 : index
    %c0_7 = arith.constant 0 : index
    %c1 = arith.constant 1 : index
    %2 = vector.load %arg2[%c0_4, %c0_5, %c0_6, %c0_7, %c1] : memref<1x1x4x18x130xf32, #tpu.memory_space<vmem>>, vector<1x1x4x16x128xf32>
    %3 = vector.shape_cast %2 : vector<1x1x4x16x128xf32> to vector<4x16x128xf32>
    %c0_8 = arith.constant 0 : index
    %c0_9 = arith.constant 0 : index
    %c0_10 = arith.constant 0 : index
    %c0_11 = arith.constant 0 : index
    %c2 = arith.constant 2 : index
    %4 = vector.load %arg2[%c0_8, %c0_9, %c0_10, %c0_11, %c2] : memref<1x1x4x18x130xf32, #tpu.memory_space<vmem>>, vector<1x1x4x16x128xf32>
    %5 = vector.shape_cast %4 : vector<1x1x4x16x128xf32> to vector<4x16x128xf32>
    %c0_12 = arith.constant 0 : index
    %c0_13 = arith.constant 0 : index
    %c0_14 = arith.constant 0 : index
    %c1_15 = arith.constant 1 : index
    %c0_16 = arith.constant 0 : index
    %6 = vector.load %arg2[%c0_12, %c0_13, %c0_14, %c1_15, %c0_16] : memref<1x1x4x18x130xf32, #tpu.memory_space<vmem>>, vector<1x1x4x16x128xf32>
    %7 = vector.shape_cast %6 : vector<1x1x4x16x128xf32> to vector<4x16x128xf32>
    %c0_17 = arith.constant 0 : index
    %c0_18 = arith.constant 0 : index
    %c0_19 = arith.constant 0 : index
    %c1_20 = arith.constant 1 : index
    %c1_21 = arith.constant 1 : index
    %8 = vector.load %arg2[%c0_17, %c0_18, %c0_19, %c1_20, %c1_21] : memref<1x1x4x18x130xf32, #tpu.memory_space<vmem>>, vector<1x1x4x16x128xf32>
    %9 = vector.shape_cast %8 : vector<1x1x4x16x128xf32> to vector<4x16x128xf32>
    %c0_22 = arith.constant 0 : index
    %c0_23 = arith.constant 0 : index
    %c0_24 = arith.constant 0 : index
    %c1_25 = arith.constant 1 : index
    %c2_26 = arith.constant 2 : index
    %10 = vector.load %arg2[%c0_22, %c0_23, %c0_24, %c1_25, %c2_26] : memref<1x1x4x18x130xf32, #tpu.memory_space<vmem>>, vector<1x1x4x16x128xf32>
    %11 = vector.shape_cast %10 : vector<1x1x4x16x128xf32> to vector<4x16x128xf32>
    %c0_27 = arith.constant 0 : index
    %c0_28 = arith.constant 0 : index
    %c0_29 = arith.constant 0 : index
    %c2_30 = arith.constant 2 : index
    %c0_31 = arith.constant 0 : index
    %12 = vector.load %arg2[%c0_27, %c0_28, %c0_29, %c2_30, %c0_31] : memref<1x1x4x18x130xf32, #tpu.memory_space<vmem>>, vector<1x1x4x16x128xf32>
    %13 = vector.shape_cast %12 : vector<1x1x4x16x128xf32> to vector<4x16x128xf32>
    %c0_32 = arith.constant 0 : index
    %c0_33 = arith.constant 0 : index
    %c0_34 = arith.constant 0 : index
    %c2_35 = arith.constant 2 : index
    %c1_36 = arith.constant 1 : index
    %14 = vector.load %arg2[%c0_32, %c0_33, %c0_34, %c2_35, %c1_36] : memref<1x1x4x18x130xf32, #tpu.memory_space<vmem>>, vector<1x1x4x16x128xf32>
    %15 = vector.shape_cast %14 : vector<1x1x4x16x128xf32> to vector<4x16x128xf32>
    %c0_37 = arith.constant 0 : index
    %c0_38 = arith.constant 0 : index
    %c0_39 = arith.constant 0 : index
    %c2_40 = arith.constant 2 : index
    %c2_41 = arith.constant 2 : index
    %16 = vector.load %arg2[%c0_37, %c0_38, %c0_39, %c2_40, %c2_41] : memref<1x1x4x18x130xf32, #tpu.memory_space<vmem>>, vector<1x1x4x16x128xf32>
    %17 = vector.shape_cast %16 : vector<1x1x4x16x128xf32> to vector<4x16x128xf32>
    %18 = tpu.concatenate %1, %3, %5, %7, %9, %11, %13, %15, %17 in 0 : vector<4x16x128xf32>, vector<4x16x128xf32>, vector<4x16x128xf32>, vector<4x16x128xf32>, vector<4x16x128xf32>, vector<4x16x128xf32>, vector<4x16x128xf32>, vector<4x16x128xf32>, vector<4x16x128xf32> -> vector<36x16x128xf32>
    %19 = vector.shape_cast %18 : vector<36x16x128xf32> to vector<36x2048xf32>
    %c0_42 = arith.constant 0 : index
    %c0_43 = arith.constant 0 : index
    %20 = vector.load %arg3[%c0_42, %c0_43] : memref<8x36xf32, #tpu.memory_space<vmem>>, vector<8x36xf32>
    %cst = arith.constant dense<0.000000e+00> : vector<8x2048xf32>
    %21 = tpu.matmul %20, %19, %cst {dimension_numbers = #tpu.dot_dimension_numbers<[1], [0], [0], [1], [0, 0, 1, 1], [], []>} : vector<8x36xf32>, vector<36x2048xf32>, vector<8x2048xf32> -> vector<8x2048xf32>
    %c0_44 = arith.constant 0 : index
    %c0_45 = arith.constant 0 : index
    %22 = vector.load %arg4[%c0_44, %c0_45] : memref<8x1xf32, #tpu.memory_space<vmem>>, vector<8x1xf32>
    %23 = vector.broadcast %22 : vector<8x1xf32> to vector<8x2048xf32>
    %24 = arith.addf %21, %23 : vector<8x2048xf32>
    %c0_46 = arith.constant 0 : index
    %c0_47 = arith.constant 0 : index
    %c0_48 = arith.constant 0 : index
    %25 = vector.load %arg5[%c0_46, %c0_47, %c0_48] : memref<1x8x2048xf32, #tpu.memory_space<vmem>>, vector<1x8x2048xf32>
    %26 = vector.shape_cast %25 : vector<1x8x2048xf32> to vector<8x2048xf32>
    %27 = vector.shape_cast %24 : vector<8x2048xf32> to vector<1x8x2048xf32>
    tpu.vector_store %arg5[%c0_46, %c0_47, %c0_48], %27 {strides = array<i32>} : memref<1x8x2048xf32, #tpu.memory_space<vmem>>, vector<1x8x2048xf32>,
    return
  }
  func.func @transform_0(%arg0: i32, %arg1: i32) -> (i32, i32, i32, i32, i32) {
    %c0_i32 = arith.constant 0 : i32
    %c0_i32_0 = arith.constant 0 : i32
    %c0_i32_1 = arith.constant 0 : i32
    %c0_i32_2 = arith.constant 0 : i32
    return %arg0, %arg1, %c0_i32, %c0_i32_0, %c0_i32_1 : i32, i32, i32, i32, i32
  }
  func.func @transform_1(%arg0: i32, %arg1: i32) -> (i32, i32) {
    %c0_i32 = arith.constant 0 : i32
    %c0_i32_0 = arith.constant 0 : i32
    %c0_i32_1 = arith.constant 0 : i32
    return %c0_i32, %c0_i32_0 : i32, i32
  }
  func.func @transform_2(%arg0: i32, %arg1: i32) -> (i32, i32) {
    %c0_i32 = arith.constant 0 : i32
    %c0_i32_0 = arith.constant 0 : i32
    %c0_i32_1 = arith.constant 0 : i32
    return %c0_i32, %c0_i32_0 : i32, i32
  }
  func.func @transform_3(%arg0: i32, %arg1: i32) -> (i32, i32, i32) {
    %c0_i32 = arith.constant 0 : i32
    %c0_i32_0 = arith.constant 0 : i32
    return %arg0, %c0_i32, %arg1 : i32, i32, i32
  }
}

</mosaic_0001>

<bundles_post_ra>
// kernel: conv_layer_forward.1
= control target key start
LH: loop header
LB: loop body
LE: loop exit
PB: predicated region body
PF: predicated region fallthrough
CT: control target
= control target key end

     0   :  { %s2835_s12 = smov 0   ;;  %s2837_s13 = smov 0   ;;  %s3761_s0 = inlined_call_operand.vmem [shape: f32[2,1,4,18,130], index: 0, kind: input, shape index: {}]   ;;  %s3762_s1 = inlined_call_operand.vmem [shape: f32[8,36], index: 1, kind: input, shape index: {}]   ;;  %s3763_s2 = inlined_call_operand.vmem [shape: f32[8,1], index: 2, kind: input, shape index: {}]   ;;  %s3764_s3 = inlined_call_operand.vmem [shape: f32[2,8,2048], index: 3, kind: output, shape index: {}]  }
   0x1   :  { %s2839_s14 = smov 0  }
   0x2 LB: > { %s25_s15 = sadd.s32 1, %s2803_s13  ;;  %p2654_p0 = scmp.ge.s32.totalorder %s2807_s14, 1  ;;  %s2807_s14 = sphi %s2839_s14, %s13_s14   ;;  %s2803_s13 = sphi %s2837_s13, %s3766_s13   ;;  %s2799_s12 = sphi %s2835_s12, %s3765_s12  }
   0x3   : > { %p27_p1 = scmp.ge.s32.totalorder %s25_s15, 2  ;;  %p157_p2 = scmp.lt.s32.totalorder %s2807_s14, 3 }
   0x5   : > { %s3768_s15 = smov (%p27_p1, %s25_s15), 0  ;;  %p158_p3 = pnand %p2654_p0, %p157_p2 }
   0x6   : > { %p189_p4 = scmp.lt.s32.totalorder (!%p158_p3), %s2799_s12, 1  ;;  %s2809_s20 = smov (!%p158_p3), 127   ;;  %vm378_vm0 = vcmask (!%p158_p3), 1046528   ;;  %v2810_v23 = vmov (!%p158_p3), 1983009808   ;;  %v697_v25 = vlaneseq (!%p158_p3)  ;;  %vm539_vm1 = vcmask (!%p158_p3), 1045504  }
   0x7   : > { %161 = sbr.rel (%p158_p3) target bundleno = 562 (0x232), region = 32  ;;  %v695_v24 = vunpack.c.l.s4 (!%p158_p3), %v2810_v23  ;;  %s2811_s21 = smov (!%p158_p3), 126   ;;  %vm304_vm2 = vcmask (!%p158_p3), 1039360   ;;  %vm353_vm3 = vcmask (!%p158_p3), 1031168   ;;  %vm1927_vm4 = vcmask (!%p158_p3), 1043456  }
   0x8   : > { %v2948_v40 = vshrl.u32 (!%p158_p3), %v697_v25, 7  ;;  %vm1923_vm5 = vcmask (!%p158_p3), 293888  }
   0x9   : > { %v696_v39 = vunpack.c.0.s8 (!%p158_p3), %v695_v24 }
   0xb   : > { %v2966_v47 = vsub.s32 (!%p158_p3), %v696_v39, %v2948_v40 }
   0xe   : > { %s3770_s12 = smov (!%p189_p4, %s2799_s12), 1 }
   0xf   : > { %s2749_s16 = smul.u32 192, %s3770_s12  ;;  %s2684_s26 = sshll.u32 %s3770_s12, 7 }
  0x10   : > { %s3734_s29 = scalar_lea.vmem %s3764_s3, %s2684_s26 }
  0x11   : > { %s2859_s19 = scalar_lea.vmem %s3761_s0, %s2749_s16 }
  0x12   : > { %v2862_v0 = vld [vmem:[%s2859_s19 + $0x30] sm:$0xff]  ;;  %v2865_v1 = vld [vmem:[%s2859_s19] sm:$0xff]  ;;  %v2872_v2 = vld [vmem:[%s2859_s19 + $0x38] sm:$0xff] }
  0x13   : > { %280 = vrot.lane.b32.xlu1 %v2862_v0, %s2809_s20  ;;  %272 = vrot.lane.b32.xlu0 %v2865_v1, %s2809_s20  ;;  %v216_v3 = vld [vmem:[%s2859_s19 + $0x8] sm:$0xff]  ;;  %v2876_v4 = vld [vmem:[%s2859_s19 + $0x60] sm:$0xff] }
  0x14   : > { %v2879_v5 = vld [vmem:[%s2859_s19 + $0x90] sm:$0xff]  ;;  %v692_v6 = vcombine.low %v2865_v1, %v2876_v4  ;;  %v693_v7 = vcombine.high %v2865_v1, %v2876_v4  ;;  %v224_v11 = vld [vmem:[%s2859_s19] sm:$0xfe]  ;;  %v2900_v13 = vld [vmem:[%s2859_s19 + $0x68] sm:$0xff] }
  0x15   : > { %v708_v8 = vcombine.low %v2862_v0, %v2879_v5  ;;  %v709_v9 = vcombine.high %v2862_v0, %v2879_v5  ;;  %v2890_v10 = vld [vmem:[%s2859_s19 + $0x10] sm:$0xff]  ;;  %v2897_v12 = vld [vmem:[%s2859_s19 + $0x40] sm:$0xff]  ;;  %v379_v14 = vrot.slane %v224_v11, 1  ;;  %v2919_v28 = vld [vmem:[%s2859_s19 + $0x98] sm:$0xff] }
  0x16   : > { %v380_v15 = vrot.slane %v2890_v10, 1  ;;  %v226_v16 = vld [vmem:[%s2859_s19 + $0x30] sm:$0xfe]  ;;  %v228_v18 = vld [vmem:[%s2859_s19 + $0x60] sm:$0xfe]  ;;  %v385_v20 = vrot.slane %v2897_v12, 1  ;;  %v2987_v59 = vrot.slane %v692_v6, %v2966_v47  ;;  %v2996_v61 = vrot.slane %v693_v7, %v2966_v47 }
  0x17   : > { %282 = vrot.lane.b32.xlu1 %v2872_v2, %s2809_s20  ;;  %274 = vrot.lane.b32.xlu0 %v216_v3, %s2809_s20  ;;  %v2905_v17 = vld [vmem:[%s2859_s19 + $0x70] sm:$0xff]  ;;  %v384_v19 = vrot.slane %v226_v16, 1  ;;  %v389_v21 = vrot.slane %v228_v18, 1  ;;  %v2915_v26 = vld [vmem:[%s2859_s19 + $0xa0] sm:$0xff]  ;;  %v2990_v60 = vrot.slane %v708_v8, %v2966_v47  ;;  %v3016_v18 = vrot.slane %v709_v9, %v2966_v47 }
  0x18   : > { %v390_v22 = vrot.slane %v2905_v17, 1  ;;  %v230_v27 = vld [vmem:[%s2859_s19 + $0x90] sm:$0xfe]  ;;  %v2922_v29 = vsel %vm378_vm0, %v379_v14, %v380_v15  ;;  %v395_v32 = vrot.slane %v2915_v26, 1  ;;  %v2951_v41 = vld [vmem:[%s2859_s19 + $0x18] sm:$0xff]  ;;  %v2960_v45 = vld [vmem:[%s2859_s19 + $0x48] sm:$0xff] }
  0x19   : > { %v394_v31 = vrot.slane %v230_v27, 1  ;;  %v2935_v35 = vsel %vm378_vm0, %v384_v19, %v385_v20  ;;  %v233_v42 = vld [vmem:[%s2859_s19 + $0x28] sm:$0x1]  ;;  %v225_v43 = vld [vmem:[%s2859_s19 + $0x20] sm:$0x1]  ;;  %v416_v44 = vrot.slane %v2951_v41, 1 }
  0x1a   : > { %v2927_v30 = vsel %vm378_vm0, %v389_v21, %v390_v22  ;;  %v2963_v46 = vld [vmem:[%s2859_s19 + $0x78] sm:$0xff]  ;;  %v418_v48 = vrot.slane %v233_v42, 1  ;;  %v382_v49 = vrot.slane %v225_v43, 1  ;;  %v227_v51 = vld [vmem:[%s2859_s19 + $0x50] sm:$0x1]  ;;  %v2971_v52 = vld [vmem:[%s2859_s19 + $0xa8] sm:$0xff] }
  0x1b   : > { %290 = vrot.lane.b32.xlu1 %v2900_v13, %s2809_s20  ;;  %288 = vrot.lane.b32.xlu0 %v2876_v4, %s2809_s20  ;;  %v860_v33 = vcombine.low %v2922_v29, %v2927_v30  ;;  %v861_v34 = vcombine.high %v2922_v29, %v2927_v30  ;;  %v2938_v36 = vsel %vm378_vm0, %v394_v31, %v395_v32  ;;  %v235_v50 = vld [vmem:[%s2859_s19 + $0x58] sm:$0x1]  ;;  %v237_v53 = vld [vmem:[%s2859_s19 + $0x88] sm:$0x1]  ;;  %v421_v62 = vrot.slane %v2960_v45, 1 }
  0x1c   : > { %v876_v37 = vcombine.low %v2935_v35, %v2938_v36  ;;  %v877_v38 = vcombine.high %v2935_v35, %v2938_v36  ;;  %v229_v54 = vld [vmem:[%s2859_s19 + $0x80] sm:$0x1]  ;;  %v2976_v55 = vsel %vm378_vm0, %v416_v44, %v418_v48  ;;  %v2979_v56 = vsel %vm378_vm0, %v380_v15, %v382_v49  ;;  %v239_v57 = vld [vmem:[%s2859_s19 + $0xb8] sm:$0x1]  ;;  %v231_v58 = vld [vmem:[%s2859_s19 + $0xb0] sm:$0x1] }
  0x1d   : > { %v423_v63 = vrot.slane %v235_v50, 1  ;;  %v426_v6 = vrot.slane %v2963_v46, 1  ;;  %v431_v8 = vrot.slane %v2971_v52, 1  ;;  %v428_v11 = vrot.slane %v237_v53, 1  ;;  %v232_v15 = vld [vmem:[%s2859_s19 + $0x8] sm:$0xfe] }
  0x1e   : > { %v392_v14 = vrot.slane %v229_v54, 1  ;;  %v397_v16 = vrot.slane %v231_v58, 1  ;;  %v3036_v9 = vrot.slane %v877_v38, %v2966_v47  ;;  %v415_v23 = vrot.slane %v232_v15, 1  ;;  %v234_v25 = vld [vmem:[%s2859_s19 + $0x38] sm:$0xfe] }
  0x1f   : > { %298 = vrot.lane.b32.xlu1 %v2919_v28, %s2809_s20  ;;  %296 = vrot.lane.b32.xlu0 %v2879_v5, %s2809_s20  ;;  %v3019_v19 = vsel %vm378_vm0, %v426_v6, %v428_v11  ;;  %v757_v31 = vcombine.high %v2987_v59, %v2990_v60  ;;  %v420_v38 = vrot.slane %v234_v25, 1  ;;  %v577_v39 = vrot.slane %v2951_v41, 2  ;;  %v249_v42 = vld [vmem:[%s2859_s19 + $0x28] sm:$0x3]  ;;  %v241_v43 = vld [vmem:[%s2859_s19 + $0x20] sm:$0x3] }
  0x20   : > { %v3024_v21 = vsel %vm378_vm0, %v390_v22, %v392_v14  ;;  %v3044_v24 = vsel %vm378_vm0, %v395_v32, %v397_v16  ;;  %v772_v32 = vcombine.low %v2996_v61, %v3016_v18  ;;  %v236_v48 = vld [vmem:[%s2859_s19 + $0x68] sm:$0xfe]  ;;  %v541_v49 = vrot.slane %v2890_v10, 2  ;;  %v251_v58 = vld [vmem:[%s2859_s19 + $0x58] sm:$0x3] }
  0x21   : > { %v543_v50 = vrot.slane %v241_v43, 2  ;;  %v422_v54 = vsel %vm378_vm0, %v420_v38, %v421_v62  ;;  %v582_v11 = vrot.slane %v2960_v45, 2  ;;  %v546_v14 = vrot.slane %v2897_v12, 2  ;;  %v253_v38 = vld [vmem:[%s2859_s19 + $0x88] sm:$0x3] }
  0x22   : > { %v584_v15 = vrot.slane %v251_v58, 2  ;;  %v587_v43 = vrot.slane %v2963_v46, 2 }
  0x23   : > { %323 = vrot.lane.b32.xlu1 %v216_v3, %s2811_s21  ;;  %321 = vrot.lane.b32.xlu0 %v2865_v1, %s2811_s21  ;;  %v387_v3 = vrot.slane %v227_v51, 1  ;;  %v3007_v1 = vsel %vm378_vm0, %v421_v62, %v423_v63  ;;  %v3086_v53 = vsel %vm539_vm1, %v541_v49, %v543_v50  ;;  %v243_v63 = vld [vmem:[%s2859_s19 + $0x50] sm:$0x3] }
  0x24   : > { %v3098_v16 = vsel %vm539_vm1, %v582_v11, %v584_v15  ;;  %v592_v15 = vrot.slane %v2971_v52, 2 }
  0x25   : > { %v3010_v7 = vsel %vm378_vm0, %v385_v20, %v387_v3  ;;  %v756_v20 = vcombine.low %v2987_v59, %v2990_v60  ;;  %v238_v3 = vld [vmem:[%s2859_s19 + $0x98] sm:$0xfe] }
  0x26   : > { %v430_v25 = vrot.slane %v238_v3, 1  ;;  %v247_v3 = vld [vmem:[%s2859_s19 + $0xb0] sm:$0x3] }
  0x27   : > { %331 = vrot.lane.b32.xlu1 %v2872_v2, %s2811_s21  ;;  %329 = vrot.lane.b32.xlu0 %v2862_v0, %s2811_s21  ;;  %v433_v2 = vrot.slane %v239_v57, 1  ;;  %v3033_v0 = vrot.slane %v861_v34, %v2966_v47  ;;  %v425_v57 = vrot.slane %v236_v48, 1  ;;  %v551_v48 = vrot.slane %v2905_v17, 2 }
  0x29   : > { %v3041_v22 = vsel %vm378_vm0, %v431_v8, %v433_v2  ;;  %v548_v2 = vrot.slane %v243_v63, 2 }
  0x2b   : > { %339 = vrot.lane.b32.xlu1 %v2900_v13, %s2811_s21  ;;  %337 = vrot.lane.b32.xlu0 %v2876_v4, %s2811_s21  ;;  %v3047_v4 = vrot.slane %v860_v33, %v2966_v47  ;;  %v3050_v13 = vrot.slane %v876_v37, %v2966_v47  ;;  %v940_v33 = vcombine.low %v3033_v0, %v3036_v9 }
  0x2c   : > { %v417_v37 = vsel %vm378_vm0, %v415_v23, %v416_v44  ;;  %v941_v44 = vcombine.high %v3033_v0, %v3036_v9  ;;  %v3101_v62 = vsel %vm539_vm1, %v546_v14, %v548_v2  ;;  %v427_v23 = vsel %vm378_vm0, %v425_v57, %v426_v6  ;;  %v255_v57 = vld [vmem:[%s2859_s19 + $0xb8] sm:$0x3] }
  0x2d   : > { %v924_v27 = vcombine.low %v3047_v4, %v3050_v13  ;;  %v925_v34 = vcombine.high %v3047_v4, %v3050_v13  ;;  %v432_v6 = vsel %vm378_vm0, %v430_v25, %v431_v8  ;;  %v556_v2 = vrot.slane %v2915_v26, 2  ;;  %v248_v25 = vld [vmem:[%s2859_s19 + $0x8] sm:$0xfc] }
  0x2f   : > { %347 = vrot.lane.b32.xlu1 %v2919_v28, %s2811_s21  ;;  %345 = vrot.lane.b32.xlu0 %v2879_v5, %s2811_s21  ;;  %v579_v28 = vrot.slane %v249_v42, 2  ;;  %v773_v5 = vcombine.high %v2996_v61, %v3016_v18  ;;  %v245_v42 = vld [vmem:[%s2859_s19 + $0x80] sm:$0x3] }
  0x30   : > { %v553_v50 = vrot.slane %v245_v42, 2  ;;  %v558_v42 = vrot.slane %v247_v3, 2 }
  0x31   : > { %v3083_v51 = vsel %vm539_vm1, %v577_v39, %v579_v28  ;;  %v589_v28 = vrot.slane %v253_v38, 2  ;;  %v594_v38 = vrot.slane %v255_v57, 2  ;;  %v576_v57 = vrot.slane %v248_v25, 2 }
  0x32   : > { %v3115_v63 = vsel %vm539_vm1, %v551_v48, %v553_v50  ;;  %v3131_v8 = vsel %vm539_vm1, %v556_v2, %v558_v42  ;;  %v240_v50 = vld [vmem:[%s2859_s19] sm:$0xfc] }
  0x33   : > { %437 = vrot.lane.b32.xlu1 %v417_v37, %s2809_s20  ;;  %435 = vrot.lane.b32.xlu0 %v2922_v29, %s2809_s20  ;;  %v3112_v58 = vsel %vm539_vm1, %v587_v43, %v589_v28  ;;  %v3128_v28 = vsel %vm539_vm1, %v592_v15, %v594_v38  ;;  %v540_v3 = vrot.slane %v240_v50, 2  ;;  %v242_v38 = vld [vmem:[%s2859_s19 + $0x30] sm:$0xfc]  ;;  %v244_v42 = vld [vmem:[%s2859_s19 + $0x60] sm:$0xfc] }
  0x34   : > { %v550_v50 = vrot.slane %v244_v42, 2 }
  0x37   : > { %445 = vrot.lane.b32.xlu1 %v422_v54, %s2809_s20  ;;  %443 = vrot.lane.b32.xlu0 %v2935_v35, %s2809_s20 }
  0x3b   : > { %453 = vrot.lane.b32.xlu1 %v427_v23, %s2809_s20  ;;  %451 = vrot.lane.b32.xlu0 %v2927_v30, %s2809_s20 }
  0x3f   : > { %461 = vrot.lane.b32.xlu1 %v432_v6, %s2809_s20  ;;  %459 = vrot.lane.b32.xlu0 %v2938_v36, %s2809_s20 }
  0x43   : > { %485 = vrot.lane.b32.xlu1 %v417_v37, %s2811_s21  ;;  %483 = vrot.lane.b32.xlu0 %v2922_v29, %s2811_s21  ;;  %v250_v37 = vld [vmem:[%s2859_s19 + $0x38] sm:$0xfc]  ;;  %v578_v29 = vsel %vm539_vm1, %v576_v57, %v577_v39  ;;  %v246_v57 = vld [vmem:[%s2859_s19 + $0x90] sm:$0xfc] }
  0x44   : > { %v254_v39 = vld [vmem:[%s2859_s19 + $0x98] sm:$0xfc] }
  0x47   : > { %493 = vrot.lane.b32.xlu1 %v422_v54, %s2811_s21  ;;  %491 = vrot.lane.b32.xlu0 %v2935_v35, %s2811_s21  ;;  %v3153_v35 = vsel %vm539_vm1, %v540_v3, %v541_v49  ;;  %v581_v54 = vrot.slane %v250_v37, 2  ;;  %v3171_v3 = vsel %vm539_vm1, %v550_v50, %v551_v48  ;;  %v591_v37 = vrot.slane %v254_v39, 2 }
  0x4b   : > { %501 = vrot.lane.b32.xlu1 %v427_v23, %s2811_s21  ;;  %499 = vrot.lane.b32.xlu0 %v2927_v30, %s2811_s21  ;;  %v545_v30 = vrot.slane %v242_v38, 2  ;;  %v252_v23 = vld [vmem:[%s2859_s19 + $0x68] sm:$0xfc]  ;;  %v555_v38 = vrot.slane %v246_v57, 2 }
  0x4c   : > { %v586_v25 = vrot.slane %v252_v23, 2 }
  0x4e   : > { %v588_v49 = vsel %vm539_vm1, %v586_v25, %v587_v43  ;;  %v2812_v43 = vmov 0.0  }
  0x4f   : > { %509 = vrot.lane.b32.xlu1 %v432_v6, %s2811_s21  ;;  %507 = vrot.lane.b32.xlu0 %v2938_v36, %s2811_s21  ;;  %v583_v6 = vsel %vm539_vm1, %v581_v54, %v582_v11  ;;  %v3162_v36 = vsel %vm539_vm1, %v545_v30, %v546_v14  ;;  %v593_v11 = vsel %vm539_vm1, %v591_v37, %v592_v15  ;;  %v2813_v30 = vmov 1934713408  }
  0x50   : > { %v3178_v14 = vsel %vm539_vm1, %v555_v38, %v556_v2  ;;  %2040 = vmatprep.mubr.f32.mxu0 %v2812_v43  ;;  %2111 = vmatprep.mubr.f32.mxu1 %v2812_v43  ;;  %v759_v23 = vunpack.c.l.s4 %v2813_v30 }
  0x52   : > { %v760_v57 = vunpack.c.0.s8 %v759_v23 }
  0x53   : > { %598 = vrot.lane.b32.xlu1 %v578_v29, %s2809_s20  ;;  %596 = vrot.lane.b32.xlu0 %v3153_v35, %s2809_s20 }
  0x57   : > { %606 = vrot.lane.b32.xlu1 %v583_v6, %s2809_s20  ;;  %604 = vrot.lane.b32.xlu0 %v3162_v36, %s2809_s20 }
  0x5b   : > { %614 = vrot.lane.b32.xlu1 %v588_v49, %s2809_s20  ;;  %612 = vrot.lane.b32.xlu0 %v3171_v3, %s2809_s20 }
  0x5f   : > { %622 = vrot.lane.b32.xlu1 %v593_v11, %s2809_s20  ;;  %620 = vrot.lane.b32.xlu0 %v3178_v14, %s2809_s20 }
  0x63   : > { %646 = vrot.lane.b32.xlu1 %v578_v29, %s2811_s21  ;;  %644 = vrot.lane.b32.xlu0 %v3153_v35, %s2811_s21 }
  0x67   : > { %654 = vrot.lane.b32.xlu1 %v583_v6, %s2811_s21  ;;  %652 = vrot.lane.b32.xlu0 %v3162_v36, %s2811_s21 }
  0x6b   : > { %662 = vrot.lane.b32.xlu1 %v588_v49, %s2811_s21  ;;  %660 = vrot.lane.b32.xlu0 %v3171_v3, %s2811_s21 }
  0x6f   : > { %670 = vrot.lane.b32.xlu1 %v593_v11, %s2811_s21  ;;  %668 = vrot.lane.b32.xlu0 %v3178_v14, %s2811_s21 }
  0x73   : > { %278 = vrot.lane.b32.xlu1 %v2951_v41, %s2809_s20  ;;  %276 = vrot.lane.b32.xlu0 %v2890_v10, %s2809_s20 }
  0x77   : > { %286 = vrot.lane.b32.xlu1 %v2960_v45, %s2809_s20  ;;  %284 = vrot.lane.b32.xlu0 %v2897_v12, %s2809_s20 }
  0x7b   : > { %294 = vrot.lane.b32.xlu1 %v2963_v46, %s2809_s20  ;;  %292 = vrot.lane.b32.xlu0 %v2905_v17, %s2809_s20 }
  0x7f   : > { %302 = vrot.lane.b32.xlu1 %v2971_v52, %s2809_s20  ;;  %300 = vrot.lane.b32.xlu0 %v2915_v26, %s2809_s20 }
  0x83   : > { %327 = vrot.lane.b32.xlu1 %v2951_v41, %s2811_s21  ;;  %325 = vrot.lane.b32.xlu0 %v2890_v10, %s2811_s21 }
  0x85   : > { %v281_v48 = vpop.permute.xlu1 %280  ;;  %v273_v15 = vpop.permute.xlu0 %272 }
  0x87   : > { %335 = vrot.lane.b32.xlu1 %v2960_v45, %s2811_s21  ;;  %333 = vrot.lane.b32.xlu0 %v2897_v12, %s2811_s21 }
  0x89   : > { %v283_v2 = vpop.permute.xlu1 %282  ;;  %v275_v29 = vpop.permute.xlu0 %274 }
  0x8a   : > { %v305_v25 = vsel %vm304_vm2, %v273_v15, %v275_v29  ;;  %v3248_v15 = vsub.s32 %v760_v57, %v2948_v40 }
  0x8b   : > { %343 = vrot.lane.b32.xlu1 %v2963_v46, %s2811_s21  ;;  %341 = vrot.lane.b32.xlu0 %v2905_v17, %s2811_s21 }
  0x8c   : > { %v780_v59 = vrot.slane %v772_v32, %v3248_v15  ;;  %v787_v32 = vrot.slane %v773_v5, %v3248_v15 }
  0x8d   : > { %v291_v41 = vpop.permute.xlu1 %290  ;;  %v289_v54 = vpop.permute.xlu0 %288 }
  0x8e   : > { %v309_v42 = vsel %vm304_vm2, %v289_v54, %v291_v41 }
  0x8f   : > { %351 = vrot.lane.b32.xlu1 %v2971_v52, %s2811_s21  ;;  %349 = vrot.lane.b32.xlu0 %v2915_v26, %s2811_s21  ;;  %v307_v52 = vsel %vm304_vm2, %v281_v48, %v283_v2  ;;  %v724_v49 = vcombine.low %v305_v25, %v309_v42  ;;  %v725_v37 = vcombine.high %v305_v25, %v309_v42 }
  0x91   : > { %v299_v10 = vpop.permute.xlu1 %298  ;;  %v297_v45 = vpop.permute.xlu0 %296  ;;  %v732_v29 = vrot.slane %v724_v49, %v2966_v47  ;;  %v739_v41 = vrot.slane %v725_v37, %v2966_v47 }
  0x92   : > { %v311_v12 = vsel %vm304_vm2, %v297_v45, %v299_v10 }
  0x93   : > { %441 = vrot.lane.b32.xlu1 %v2976_v55, %s2809_s20  ;;  %439 = vrot.lane.b32.xlu0 %v2979_v56, %s2809_s20  ;;  %v740_v26 = vcombine.low %v307_v52, %v311_v12  ;;  %v741_v6 = vcombine.high %v307_v52, %v311_v12 }
  0x95   : > { %v324_v17 = vpop.permute.xlu1 %323  ;;  %v322_v46 = vpop.permute.xlu0 %321  ;;  %v748_v38 = vrot.slane %v740_v26, %v2966_v47  ;;  %v755_v11 = vrot.slane %v741_v6, %v2966_v47  ;;  %v764_v26 = vrot.slane %v756_v20, %v3248_v15  ;;  %v932_v6 = vrot.slane %v924_v27, %v3248_v15 }
  0x96   : > { %v354_v45 = vsel %vm353_vm3, %v322_v46, %v324_v17  ;;  %v771_v46 = vrot.slane %v757_v31, %v3248_v15  ;;  %v939_v20 = vrot.slane %v925_v34, %v3248_v15 }
  0x97   : > { %449 = vrot.lane.b32.xlu1 %v3007_v1, %s2809_s20  ;;  %447 = vrot.lane.b32.xlu0 %v3010_v7, %s2809_s20  ;;  %v804_v10 = vcombine.low %v739_v41, %v755_v11  ;;  %v788_v12 = vcombine.low %v732_v29, %v748_v38  ;;  %v789_v30 = vcombine.high %v732_v29, %v748_v38 }
  0x98   : > { %v805_v25 = vcombine.high %v739_v41, %v755_v11  ;;  %v948_v38 = vrot.slane %v940_v33, %v3248_v15 }
  0x99   : > { %v332_v50 = vpop.permute.xlu1 %331  ;;  %v330_v39 = vpop.permute.xlu0 %329  ;;  %v796_v27 = vrot.slane %v788_v12, %v3248_v15  ;;  %v812_v60 = vrot.slane %v804_v10, %v3248_v15 }
  0x9a   : > { %v356_v57 = vsel %vm353_vm3, %v330_v39, %v332_v50  ;;  %v803_v50 = vrot.slane %v789_v30, %v3248_v15  ;;  %v819_v11 = vrot.slane %v805_v25, %v3248_v15 }
  0x9b   : > { %457 = vrot.lane.b32.xlu1 %v3019_v19, %s2809_s20  ;;  %455 = vrot.lane.b32.xlu0 %v3024_v21, %s2809_s20  ;;  %v821_v41 = vcombine.high %v764_v26, %v796_v27  ;;  %v820_v61 = vcombine.low %v764_v26, %v796_v27  ;;  %v825_v18 = vcombine.high %v780_v59, %v812_v60 }
  0x9c   : > { %v823_v9 = vcombine.high %v771_v46, %v803_v50  ;;  %v822_v12 = vcombine.low %v771_v46, %v803_v50  ;;  %v827_v30 = vcombine.high %v787_v32, %v819_v11 }
  0x9d   : > { %v340_v48 = vpop.permute.xlu1 %339  ;;  %v338_v2 = vpop.permute.xlu0 %337 }
  0x9e   : > { %v358_v54 = vsel %vm353_vm3, %v338_v2, %v340_v48  ;;  %v955_v48 = vrot.slane %v941_v44, %v3248_v15 }
  0x9f   : > { %465 = vrot.lane.b32.xlu1 %v3041_v22, %s2809_s20  ;;  %463 = vrot.lane.b32.xlu0 %v3044_v24, %s2809_s20  ;;  %v828_v23 = vcombine.low %v354_v45, %v358_v54  ;;  %v829_v40 = vcombine.high %v354_v45, %v358_v54 }
  0xa1   : > { %v348_v52 = vpop.permute.xlu1 %347  ;;  %v346_v42 = vpop.permute.xlu0 %345  ;;  %v843_v31 = vrot.slane %v829_v40, %v2966_v47 }
  0xa2   : > { %v360_v17 = vsel %vm353_vm3, %v346_v42, %v348_v52 }
  0xa3   : > { %v844_v49 = vcombine.low %v356_v57, %v360_v17  ;;  %v845_v37 = vcombine.high %v356_v57, %v360_v17  ;;  %489 = vrot.lane.b32.xlu1 %v2976_v55, %s2811_s21  ;;  %487 = vrot.lane.b32.xlu0 %v2979_v56, %s2811_s21  ;;  %v836_v55 = vrot.slane %v828_v23, %v2966_v47 }
  0xa4   : > { %v824_v23 = vcombine.low %v780_v59, %v812_v60 }
  0xa5   : > { %v852_v39 = vrot.slane %v844_v49, %v2966_v47  ;;  %v859_v4 = vrot.slane %v845_v37, %v2966_v47  ;;  %v3291_v13 = vpop.permute.xlu1 %437  ;;  %v3293_v34 = vpop.permute.xlu0 %435 }
  0xa7   : > { %v908_v2 = vcombine.low %v843_v31, %v859_v4  ;;  %v909_v29 = vcombine.high %v843_v31, %v859_v4  ;;  %497 = vrot.lane.b32.xlu1 %v3007_v1, %s2811_s21  ;;  %495 = vrot.lane.b32.xlu0 %v3010_v7, %s2811_s21  ;;  %v892_v33 = vcombine.low %v836_v55, %v852_v39 }
  0xa8   : > { %v893_v54 = vcombine.high %v836_v55, %v852_v39  ;;  %v826_v31 = vcombine.low %v787_v32, %v819_v11 }
  0xa9   : > { %v3312_v5 = vpop.permute.xlu1 %445  ;;  %v3314_v10 = vpop.permute.xlu0 %443  ;;  %v900_v0 = vrot.slane %v892_v33, %v3248_v15  ;;  %v916_v44 = vrot.slane %v908_v2, %v3248_v15  ;;  %v923_v45 = vrot.slane %v909_v29, %v3248_v15 }
  0xaa   : > { %v907_v1 = vrot.slane %v893_v54, %v3248_v15 }
  0xab   : > { %505 = vrot.lane.b32.xlu1 %v3019_v19, %s2811_s21  ;;  %503 = vrot.lane.b32.xlu0 %v3024_v21, %s2811_s21  ;;  %v957_v40 = vcombine.high %v900_v0, %v932_v6  ;;  %v956_v52 = vcombine.low %v900_v0, %v932_v6  ;;  %v961_v42 = vcombine.high %v916_v44, %v948_v38 }
  0xac   : > { %v959_v26 = vcombine.high %v907_v1, %v939_v20  ;;  %v958_v25 = vcombine.low %v907_v1, %v939_v20  ;;  %v963_v57 = vcombine.high %v923_v45, %v955_v48  ;;  %v960_v17 = vcombine.low %v916_v44, %v948_v38 }
  0xad   : > { %v454_v49 = vpop.permute.xlu1 %453  ;;  %v452_v37 = vpop.permute.xlu0 %451  ;;  %v2685_v27 = vpack.c.bf16 %v957_v40, %v821_v41  ;;  %v2687_v55 = vpack.c.bf16 %v956_v52, %v820_v61  ;;  %v3324_v46 = vpack.c.bf16 %v961_v42, %v825_v18  ;;  %v962_v50 = vcombine.low %v923_v45, %v955_v48 }
  0xae   : > { %v2693_v59 = vpack.c.bf16 %v959_v26, %v823_v9  ;;  %v2695_v60 = vpack.c.bf16 %v958_v25, %v822_v12  ;;  %v3326_v19 = vpack.c.bf16 %v963_v57, %v827_v30  ;;  %v3332_v6 = vpack.c.bf16 %v960_v17, %v824_v23 }
  0xaf   : > { %513 = vrot.lane.b32.xlu1 %v3041_v22, %s2811_s21  ;;  %511 = vrot.lane.b32.xlu0 %v3044_v24, %s2811_s21  ;;  %v3334_v20 = vpack.c.bf16 %v962_v50, %v826_v31  ;;  %v1116_v1 = vcombine.low %v3162_v36, %v3178_v14  ;;  %v3381_v12 = vsel %vm304_vm2, %v3314_v10, %v3312_v5 }
  0xb0   : > { %2686 = vmatprep.subr.bf16.mxu0 %v2685_v27  ;;  %2694 = vmatprep.subr.bf16.mxu1 %v2693_v59  ;;  %v3384_v30 = vsel %vm304_vm2, %v452_v37, %v454_v49  ;;  %v3398_v5 = vsel %vm304_vm2, %v3293_v34, %v3291_v13 }
  0xb1   : > { %2688 = vmatpush1.bf16.msra.mxu0 %v2687_v55  ;;  %2696 = vmatpush1.bf16.msra.mxu1 %v2695_v60  ;;  %v462_v39 = vpop.permute.xlu1 %461  ;;  %v460_v4 = vpop.permute.xlu0 %459  ;;  %v964_v10 = vcombine.low %v3398_v5, %v3384_v30  ;;  %v1124_v17 = vrot.slane %v1116_v1, %v2966_v47  ;;  %v1101_v1 = vcombine.high %v3153_v35, %v3171_v3 }
  0xb2   : > { %v3362_v18 = vsel %vm304_vm2, %v460_v4, %v462_v39 }
  0xb3   : > { %602 = vrot.lane.b32.xlu1 %v3083_v51, %s2809_s20  ;;  %600 = vrot.lane.b32.xlu0 %v3086_v53, %s2809_s20  ;;  %v980_v40 = vcombine.low %v3381_v12, %v3362_v18  ;;  %v972_v37 = vrot.slane %v964_v10, %v2966_v47 }
  0xb5   : > { %v486_v22 = vpop.permute.xlu1 %485  ;;  %v484_v38 = vpop.permute.xlu0 %483  ;;  %v988_v13 = vrot.slane %v980_v40, %v2966_v47 }
  0xb6   : > { %v3387_v23 = vsel %vm353_vm3, %v484_v38, %v486_v22 }
  0xb7   : > { %610 = vrot.lane.b32.xlu1 %v3098_v16, %s2809_s20  ;;  %608 = vrot.lane.b32.xlu0 %v3101_v62, %s2809_s20  ;;  %v1028_v4 = vcombine.low %v972_v37, %v988_v13 }
  0xb9   : > { %v494_v32 = vpop.permute.xlu1 %493  ;;  %v492_v11 = vpop.permute.xlu0 %491 }
  0xba   : > { %v3365_v0 = vsel %vm353_vm3, %v492_v11, %v494_v32  ;;  %v1029_v32 = vcombine.high %v972_v37, %v988_v13 }
  0xbb   : > { %618 = vrot.lane.b32.xlu1 %v3112_v58, %s2809_s20  ;;  %616 = vrot.lane.b32.xlu0 %v3115_v63, %s2809_s20 }
  0xbc   : > { %v1043_v40 = vrot.slane %v1029_v32, %v3248_v15 }
  0xbd   : > { %v502_v48 = vpop.permute.xlu1 %501  ;;  %v500_v2 = vpop.permute.xlu0 %499 }
  0xbe   : > { %v3368_v9 = vsel %vm353_vm3, %v500_v2, %v502_v48 }
  0xbf   : > { %626 = vrot.lane.b32.xlu1 %v3128_v28, %s2809_s20  ;;  %624 = vrot.lane.b32.xlu0 %v3131_v8, %s2809_s20  ;;  %v996_v52 = vcombine.low %v3387_v23, %v3368_v9 }
  0xc1   : > { %v510_v29 = vpop.permute.xlu1 %509  ;;  %v508_v33 = vpop.permute.xlu0 %507  ;;  %v1004_v34 = vrot.slane %v996_v52, %v2966_v47  ;;  %v1117_v52 = vcombine.high %v3162_v36, %v3178_v14 }
  0xc2   : > { %v3357_v61 = vsel %vm353_vm3, %v508_v33, %v510_v29 }
  0xc3   : > { %650 = vrot.lane.b32.xlu1 %v3083_v51, %s2811_s21  ;;  %648 = vrot.lane.b32.xlu0 %v3086_v53, %s2811_s21  ;;  %v1100_v51 = vcombine.low %v3153_v35, %v3171_v3  ;;  %v1012_v44 = vcombine.low %v3365_v0, %v3357_v61  ;;  %v1013_v3 = vcombine.high %v3365_v0, %v3357_v61 }
  0xc4   : > { %v997_v61 = vcombine.high %v3387_v23, %v3368_v9 }
  0xc5   : > { %v599_v41 = vpop.permute.xlu1 %598  ;;  %v597_v54 = vpop.permute.xlu0 %596  ;;  %v1020_v42 = vrot.slane %v1012_v44, %v2966_v47  ;;  %v1108_v57 = vrot.slane %v1100_v51, %v2966_v47 }
  0xc6   : > { %v3415_v49 = vsel %vm304_vm2, %v597_v54, %v599_v41 }
  0xc7   : > { %658 = vrot.lane.b32.xlu1 %v3098_v16, %s2811_s21  ;;  %656 = vrot.lane.b32.xlu0 %v3101_v62, %s2811_s21  ;;  %v1060_v27 = vcombine.low %v1004_v34, %v1020_v42  ;;  %v1061_v60 = vcombine.high %v1004_v34, %v1020_v42  ;;  %v1165_v38 = vcombine.high %v1108_v57, %v1124_v17 }
  0xc9   : > { %v607_v45 = vpop.permute.xlu1 %606  ;;  %v605_v16 = vpop.permute.xlu0 %604  ;;  %v1068_v33 = vrot.slane %v1060_v27, %v3248_v15  ;;  %v1075_v54 = vrot.slane %v1061_v60, %v3248_v15 }
  0xca   : > { %v630_v31 = vsel %vm304_vm2, %v605_v16, %v607_v45  ;;  %v1036_v45 = vrot.slane %v1028_v4, %v3248_v15  ;;  %v1179_v16 = vrot.slane %v1165_v38, %v3248_v15  ;;  %v981_v38 = vcombine.high %v3381_v12, %v3362_v18 }
  0xcb   : > { %666 = vrot.lane.b32.xlu1 %v3112_v58, %s2811_s21  ;;  %664 = vrot.lane.b32.xlu0 %v3115_v63, %s2811_s21  ;;  %v1095_v13 = vcombine.high %v1043_v40, %v1075_v54  ;;  %v1094_v37 = vcombine.low %v1043_v40, %v1075_v54  ;;  %v1027_v18 = vrot.slane %v1013_v3, %v2966_v47 }
  0xcc   : > { %v1092_v34 = vcombine.low %v1036_v45, %v1068_v33 }
  0xcd   : > { %v615_v26 = vpop.permute.xlu1 %614  ;;  %v613_v25 = vpop.permute.xlu0 %612 }
  0xce   : > { %v3408_v58 = vsel %vm304_vm2, %v613_v25, %v615_v26  ;;  %v1093_v26 = vcombine.high %v1036_v45, %v1068_v33  ;;  %v2814_v33 = vmov 0  }
  0xcf   : > { %674 = vrot.lane.b32.xlu1 %v3128_v28, %s2811_s21  ;;  %672 = vrot.lane.b32.xlu0 %v3131_v8, %s2811_s21  ;;  %v1132_v55 = vcombine.low %v3415_v49, %v3408_v58  ;;  %v1164_v28 = vcombine.low %v1108_v57, %v1124_v17  ;;  %v1133_v36 = vcombine.high %v3415_v49, %v3408_v58  ;;  %v1917_v58 = vld [vmem:[%s3763_s2] sm:$0xff] }
  0xd0   : > { %v965_v49 = vcombine.high %v3398_v5, %v3384_v30  ;;  %2780 = vset.pattern.permute.xlu0 %v2814_v33  ;;  %v1011_v5 = vrot.slane %v997_v61, %v2966_v47 }
  0xd1   : > { %v623_v50 = vpop.permute.xlu1 %622  ;;  %v621_v59 = vpop.permute.xlu0 %620  ;;  %v1140_v11 = vrot.slane %v1132_v55, %v2966_v47  ;;  %v1172_v41 = vrot.slane %v1164_v28, %v3248_v15  ;;  %v1147_v12 = vrot.slane %v1133_v36, %v2966_v47 }
  0xd2   : > { %v634_v39 = vsel %vm304_vm2, %v621_v59, %v623_v50  ;;  %v1076_v40 = vcombine.low %v1011_v5, %v1027_v18 }
  0xd3   : > { %v1148_v22 = vcombine.low %v630_v31, %v634_v39  ;;  %v1149_v17 = vcombine.high %v630_v31, %v634_v39  ;;  %v1115_v31 = vrot.slane %v1101_v1, %v2966_v47  ;;  %v1131_v39 = vrot.slane %v1117_v52, %v2966_v47  ;;  %1920 = vperm.xlu0 %2780, %v1917_v58  }
  0xd4   : > { %v1077_v52 = vcombine.high %v1011_v5, %v1027_v18 }
  0xd5   : > { %v1156_v48 = vrot.slane %v1148_v22, %v2966_v47  ;;  %v647_v2 = vpop.permute.xlu1 %646  ;;  %v645_v29 = vpop.permute.xlu0 %644  ;;  %v1163_v0 = vrot.slane %v1149_v17, %v2966_v47  ;;  %v1180_v30 = vcombine.low %v1115_v31, %v1131_v39  ;;  %v1181_v1 = vcombine.high %v1115_v31, %v1131_v39 }
  0xd7   : > { %v1196_v51 = vcombine.low %v1140_v11, %v1156_v48  ;;  %v1197_v44 = vcombine.high %v1140_v11, %v1156_v48  ;;  %v676_v11 = vsel %vm353_vm3, %v645_v29, %v647_v2  ;;  %v1212_v2 = vcombine.low %v1147_v12, %v1163_v0 }
  0xd8   : > { %v1213_v45 = vcombine.high %v1147_v12, %v1163_v0  ;;  %v3484_v12 = vld [vmem:[%s3762_s1] sm:$0xff] }
  0xd9   : > { %v655_v10 = vpop.permute.xlu1 %654  ;;  %v653_v42 = vpop.permute.xlu0 %652  ;;  %v1204_v25 = vrot.slane %v1196_v51, %v3248_v15  ;;  %v1211_v57 = vrot.slane %v1197_v44, %v3248_v15  ;;  %v979_v44 = vrot.slane %v965_v49, %v2966_v47 }
  0xda   : > { %v678_v54 = vsel %vm353_vm3, %v653_v42, %v655_v10  ;;  %v1227_v3 = vrot.slane %v1213_v45, %v3248_v15 }
  0xdb   : > { %v1229_v27 = vcombine.high %v1172_v41, %v1204_v25  ;;  %v1231_v55 = vcombine.high %v1179_v16, %v1211_v57  ;;  %v1228_v50 = vcombine.low %v1172_v41, %v1204_v25  ;;  %v1230_v35 = vcombine.low %v1179_v16, %v1211_v57 }
  0xdc   : > { %v995_v41 = vrot.slane %v981_v38, %v2966_v47 }
  0xdd   : > { %v663_v14 = vpop.permute.xlu1 %662  ;;  %v661_v59 = vpop.permute.xlu0 %660  ;;  %v2689_v60 = vpack.c.bf16 %v1229_v27, %v1093_v26  ;;  %v2697_v28 = vpack.c.bf16 %v1231_v55, %v1095_v13  ;;  %v2691_v4 = vpack.c.bf16 %v1228_v50, %v1092_v34  ;;  %v2699_v22 = vpack.c.bf16 %v1230_v35, %v1094_v37 }
  0xde   : > { %v680_v32 = vsel %vm353_vm3, %v661_v59, %v663_v14  ;;  %v1044_v57 = vcombine.low %v979_v44, %v995_v41  ;;  %v1188_v13 = vrot.slane %v1180_v30, %v3248_v15  ;;  %v1045_v34 = vcombine.high %v979_v44, %v995_v41 }
  0xdf   : > { %2690 = vmatprep.subr.bf16.mxu0 %v2689_v60  ;;  %2698 = vmatprep.subr.bf16.mxu1 %v2697_v28  ;;  %v1236_v9 = vcombine.low %v676_v11, %v680_v32  ;;  %v1237_v17 = vcombine.high %v676_v11, %v680_v32  ;;  %v1220_v55 = vrot.slane %v1212_v2, %v3248_v15 }
  0xe0   : > { %2692 = vmatpush1.bf16.msra.mxu0 %v2691_v4  ;;  %2700 = vmatpush1.bf16.msra.mxu1 %v2699_v22  ;;  %v1195_v35 = vrot.slane %v1181_v1, %v3248_v15  ;;  %v1084_v28 = vrot.slane %v1076_v40, %v3248_v15  ;;  %v1091_v4 = vrot.slane %v1077_v52, %v3248_v15 }
  0xe1   : > { %v671_v23 = vpop.permute.xlu1 %670  ;;  %v669_v48 = vpop.permute.xlu0 %668  ;;  %v1244_v26 = vrot.slane %v1236_v9, %v2966_v47  ;;  %v1251_v22 = vrot.slane %v1237_v17, %v2966_v47  ;;  %v1052_v31 = vrot.slane %v1044_v57, %v3248_v15  ;;  %v1233_v32 = vcombine.high %v1188_v13, %v1220_v55 }
  0xe2   : > { %v682_v51 = vsel %vm353_vm3, %v669_v48, %v671_v23  ;;  %v1059_v61 = vrot.slane %v1045_v34, %v3248_v15  ;;  %v1235_v49 = vcombine.high %v1195_v35, %v1227_v3  ;;  %v1232_v41 = vcombine.low %v1188_v13, %v1220_v55 }
  0xe3   : > { %v1252_v29 = vcombine.low %v678_v54, %v682_v51  ;;  %v1253_v16 = vcombine.high %v678_v54, %v682_v51  ;;  %v1097_v9 = vcombine.high %v1052_v31, %v1084_v28  ;;  %v1234_v30 = vcombine.low %v1195_v35, %v1227_v3 }
  0xe4   : > { %v1099_v23 = vcombine.high %v1059_v61, %v1091_v4  ;;  %v1096_v44 = vcombine.low %v1052_v31, %v1084_v28  ;;  %v1098_v45 = vcombine.low %v1059_v61, %v1091_v4  ;;  %v1473_v28 = vcombine.high %v2979_v56, %v3024_v21 }
  0xe5   : > { %v1260_v25 = vrot.slane %v1252_v29, %v2966_v47  ;;  %v279_v10 = vpop.permute.xlu1 %278  ;;  %v277_v42 = vpop.permute.xlu0 %276  ;;  %v1267_v50 = vrot.slane %v1253_v16, %v2966_v47  ;;  %v2705_v51 = vpack.c.bf16 %v1233_v32, %v1097_v9 }
  0xe6   : > { %v3487_v48 = vsel %vm304_vm2, %v277_v42, %v279_v10  ;;  %v2713_v29 = vpack.c.bf16 %v1235_v49, %v1099_v23  ;;  %v2707_v52 = vpack.c.bf16 %v1232_v41, %v1096_v44  ;;  %v2782_v10 = vld [vmem:[%s2859_s19 + $0x70] sm:$0xff] }
  0xe7   : > { %v1268_v37 = vcombine.low %v1244_v26, %v1260_v25  ;;  %v1269_v27 = vcombine.high %v1244_v26, %v1260_v25  ;;  %v1284_v0 = vcombine.low %v1251_v22, %v1267_v50  ;;  %v1285_v58 = vcombine.high %v1251_v22, %v1267_v50  ;;  %v2781_v25 = vld [vmem:[%s2859_s19 + $0x10] sm:$0xff] }
  0xe8   : > { %v2715_v26 = vpack.c.bf16 %v1234_v30, %v1098_v45  ;;  %v1304_v42 = vcombine.low %v2781_v25, %v2782_v10  ;;  %v1305_v3 = vcombine.high %v2781_v25, %v2782_v10 }
  0xe9   : > { %v1276_v36 = vrot.slane %v1268_v37, %v3248_v15  ;;  %v1283_v14 = vrot.slane %v1269_v27, %v3248_v15  ;;  %v287_v59 = vpop.permute.xlu1 %286  ;;  %v285_v60 = vpop.permute.xlu0 %284  ;;  %v1292_v5 = vrot.slane %v1284_v0, %v3248_v15  ;;  %v1299_v2 = vrot.slane %v1285_v58, %v3248_v15  ;;  %v2783_v37 = vld [vmem:[%s2859_s19 + $0x40] sm:$0xff] }
  0xea   : > { %v308_v16 = vsel %vm304_vm2, %v285_v60, %v287_v59  ;;  %v2784_v27 = vld [vmem:[%s2859_s19 + $0xa0] sm:$0xff]  ;;  %v1488_v59 = vcombine.low %v3010_v7, %v3044_v24  ;;  %v1312_v31 = vrot.slane %v1304_v42, %v2966_v47 }
  0xeb   : > { %v1300_v39 = vcombine.high %v1276_v36, %v2812_v43  ;;  %v1301_v38 = vcombine.high %v1283_v14, %v2812_v43  ;;  %v1320_v55 = vcombine.low %v2783_v37, %v2784_v27 }
  0xec   : > { %v1496_v0 = vrot.slane %v1488_v59, %v2966_v47 }
  0xed   : > { %v295_v11 = vpop.permute.xlu1 %294  ;;  %v293_v18 = vpop.permute.xlu0 %292  ;;  %2658 = vmatprep.subr.msk.mxu0 %vm1927_vm4, %v1300_v39  ;;  %2661 = vmatprep.subr.msk.mxu1 %vm1927_vm4, %v1301_v38  ;;  %v1328_v39 = vrot.slane %v1320_v55, %v2966_v47  ;;  %v1489_v38 = vcombine.high %v3010_v7, %v3044_v24  ;;  %v1487_v24 = vrot.slane %v1473_v28, %v2966_v47 }
  0xee   : > { %v3490_v33 = vsel %vm304_vm2, %v293_v18, %v295_v11  ;;  %2659 = vmatpush1.msk.msra.mxu0 %vm1927_vm4, %v1276_v36  ;;  %2662 = vmatpush1.msk.msra.mxu1 %vm1927_vm4, %v1283_v14  ;;  %v1321_v36 = vcombine.high %v2783_v37, %v2784_v27  ;;  %v1472_v14 = vcombine.low %v2979_v56, %v3024_v21 }
  0xef   : > { %v1337_v54 = vcombine.high %v3487_v48, %v3490_v33  ;;  %2702 = vmatprep.subr.bf16.mxu0 %v3324_v46  ;;  %2710 = vmatprep.subr.bf16.mxu1 %v3326_v19  ;;  %v1336_v32 = vcombine.low %v3487_v48, %v3490_v33  ;;  %v1319_v56 = vrot.slane %v1305_v3, %v2966_v47 }
  0xf0   : > { %2660 = vmatmul.mubr.msk.f32.vlgmr.msra.gmra.mrb[0].mxu0 %vm1923_vm5, %v3484_v12  ;;  %2663 = vmatmul.mubr.msk.f32.vlgmr.msra.gmra.mrb[0].mxu1 %vm1923_vm5, %v3484_v12  ;;  %v1335_v21 = vrot.slane %v1321_v36, %v2966_v47  ;;  %v1480_v61 = vrot.slane %v1472_v14, %v2966_v47  ;;  %v1368_v11 = vcombine.low %v1312_v31, %v1328_v39 }
  0xf1   : > { %2704 = vmatpush1.bf16.msra.mxu0 %v3332_v6  ;;  %2712 = vmatpush1.bf16.msra.mxu1 %v3334_v20  ;;  %v303_v46 = vpop.permute.xlu1 %302  ;;  %v301_v19 = vpop.permute.xlu0 %300  ;;  %v1302_v6 = vcombine.high %v1292_v5, %v2812_v43  ;;  %v1303_v20 = vcombine.high %v1299_v2, %v2812_v43  ;;  %v3515_v57 = vrot.slane %v1337_v54, %v2966_v47 }
  0xf2   : > { %v312_v1 = vsel %vm304_vm2, %v301_v19, %v303_v46  ;;  %2706 = vmatprep.subr.bf16.mxu0 %v2705_v51  ;;  %2714 = vmatprep.subr.bf16.mxu1 %v2713_v29  ;;  %v1369_v18 = vcombine.high %v1312_v31, %v1328_v39  ;;  %v1503_v9 = vrot.slane %v1489_v38, %v2966_v47 }
  0xf3   : > { %v1353_v40 = vcombine.high %v308_v16, %v312_v1  ;;  %2182 = vmatprep.mubr.f32.mxu0 %v2812_v43  ;;  %2253 = vmatprep.mubr.f32.mxu1 %v2812_v43  ;;  %v1352_v60 = vcombine.low %v308_v16, %v312_v1  ;;  %v1344_v23 = vrot.slane %v1336_v32, %v2966_v47 }
  0xf4   : > { %v1384_v54 = vcombine.low %v1319_v56, %v1335_v21  ;;  %v1385_v51 = vcombine.high %v1319_v56, %v1335_v21  ;;  %v1537_v29 = vcombine.high %v1480_v61, %v1496_v0  ;;  %v1376_v45 = vrot.slane %v1368_v11, %v3248_v15 }
  0xf5   : > { %v3518_v17 = vrot.slane %v1353_v40, %v2966_v47  ;;  %2708 = vmatpush1.bf16.msra.mxu0 %v2707_v52  ;;  %2716 = vmatpush1.bf16.msra.mxu1 %v2715_v26  ;;  %v328_v13 = vpop.permute.xlu1 %327  ;;  %v326_v34 = vpop.permute.xlu0 %325  ;;  %v1360_v7 = vrot.slane %v1352_v60, %v2966_v47  ;;  %v1383_v16 = vrot.slane %v1369_v18, %v3248_v15 }
  0xf6   : > { %2664 = vmatprep.subr.msk.mxu0 %vm1927_vm4, %v1302_v6  ;;  %2667 = vmatprep.subr.msk.mxu1 %vm1927_vm4, %v1303_v20  ;;  %v355_v48 = vsel %vm353_vm3, %v326_v34, %v328_v13  ;;  %v1552_v52 = vcombine.low %v1487_v24, %v1503_v9  ;;  %v1553_v26 = vcombine.high %v1487_v24, %v1503_v9 }
  0xf7   : > { %v1416_v50 = vcombine.low %v3515_v57, %v3518_v17  ;;  %v1417_v35 = vcombine.high %v3515_v57, %v3518_v17  ;;  %v1400_v30 = vcombine.low %v1344_v23, %v1360_v7  ;;  %v1392_v25 = vrot.slane %v1384_v54, %v3248_v15 }
  0xf8   : > { %v1399_v10 = vrot.slane %v1385_v51, %v3248_v15  ;;  %v1551_v37 = vrot.slane %v1537_v29, %v3248_v15  ;;  %v1560_v28 = vrot.slane %v1552_v52, %v3248_v15 }
  0xf9   : > { %2665 = vmatpush1.msk.msra.mxu0 %vm1927_vm4, %v1292_v5  ;;  %2668 = vmatpush1.msk.msra.mxu1 %vm1927_vm4, %v1299_v2  ;;  %v336_v4 = vpop.permute.xlu1 %335  ;;  %v334_v22 = vpop.permute.xlu0 %333  ;;  %v1401_v5 = vcombine.high %v1344_v23, %v1360_v7  ;;  %v1536_v2 = vcombine.low %v1480_v61, %v1496_v0  ;;  %v1408_v42 = vrot.slane %v1400_v30, %v3248_v15 }
  0xfa   : > { %2666 = vmatmul.mubr.msk.f32.vlgmr.msra.gmra.mrb[2].mxu0 %vm1923_vm5, %v3484_v12  ;;  %2669 = vmatmul.mubr.msk.f32.vlgmr.msra.gmra.mrb[2].mxu1 %vm1923_vm5, %v3484_v12  ;;  %v357_v1 = vsel %vm353_vm3, %v334_v22, %v336_v4  ;;  %v1424_v60 = vrot.slane %v1416_v50, %v3248_v15  ;;  %v1431_v4 = vrot.slane %v1417_v35, %v3248_v15 }
  0xfb   : > { %2324 = vmatprep.mubr.f32.mxu0 %v2812_v43  ;;  %2395 = vmatprep.mubr.f32.mxu1 %v2812_v43  ;;  %v1544_v13 = vrot.slane %v1536_v2, %v3248_v15  ;;  %v1415_v34 = vrot.slane %v1401_v5, %v3248_v15  ;;  %v1567_v22 = vrot.slane %v1553_v26, %v3248_v15 }
  0xfc   : > { %v1433_v56 = vcombine.high %v1376_v45, %v1408_v42  ;;  %v1432_v61 = vcombine.low %v1376_v45, %v1408_v42  ;;  %v1437_v17 = vcombine.high %v1392_v25, %v1424_v60  ;;  %v1439_v35 = vcombine.high %v1399_v10, %v1431_v4 }
  0xfd   : > { %v344_v58 = vpop.permute.xlu1 %343  ;;  %v342_v49 = vpop.permute.xlu0 %341  ;;  %v1435_v21 = vcombine.high %v1383_v16, %v1415_v34  ;;  %v1434_v0 = vcombine.low %v1383_v16, %v1415_v34  ;;  %v1436_v11 = vcombine.low %v1392_v25, %v1424_v60  ;;  %v1438_v18 = vcombine.low %v1399_v10, %v1431_v4 }
  0xfe   : > { %v359_v33 = vsel %vm353_vm3, %v342_v49, %v344_v58 }
  0xff   : > { %v1441_v41 = vcombine.high %v355_v48, %v359_v33  ;;  %v1440_v46 = vcombine.low %v355_v48, %v359_v33 }
 0x101   : > { %v352_v19 = vpop.permute.xlu1 %351  ;;  %v350_v44 = vpop.permute.xlu0 %349  ;;  %v1448_v27 = vrot.slane %v1440_v46, %v2966_v47  ;;  %v1455_v55 = vrot.slane %v1441_v41, %v2966_v47 }
 0x102   : > { %v361_v40 = vsel %vm353_vm3, %v350_v44, %v352_v19 }
 0x103   : > { %v1456_v6 = vcombine.low %v357_v1, %v361_v40  ;;  %v1457_v20 = vcombine.high %v357_v1, %v361_v40 }
 0x105   : > { %v1464_v3 = vrot.slane %v1456_v6, %v2966_v47  ;;  %v1471_v36 = vrot.slane %v1457_v20, %v2966_v47  ;;  %v3572_v14 = vpop.permute.xlu1 %441  ;;  %v3574_v59 = vpop.permute.xlu0 %439 }
 0x107   : > { %v1504_v31 = vcombine.low %v1448_v27, %v1464_v3  ;;  %v1505_v39 = vcombine.high %v1448_v27, %v1464_v3  ;;  %v1520_v38 = vcombine.low %v1455_v55, %v1471_v36  ;;  %v1521_v32 = vcombine.high %v1455_v55, %v1471_v36 }
 0x109   : > { %v450_v7 = vpop.permute.xlu1 %449  ;;  %v448_v24 = vpop.permute.xlu0 %447  ;;  %v1512_v50 = vrot.slane %v1504_v31, %v3248_v15  ;;  %v1519_v58 = vrot.slane %v1505_v39, %v3248_v15  ;;  %v1528_v49 = vrot.slane %v1520_v38, %v3248_v15  ;;  %v1535_v57 = vrot.slane %v1521_v32, %v3248_v15 }
 0x10a   : > { %v1728_v38 = vcombine.low %v3101_v62, %v3131_v8  ;;  %v3617_v32 = vsel %vm304_vm2, %v448_v24, %v450_v7 }
 0x10b   : > { %v1569_v9 = vcombine.high %v1512_v50, %v1544_v13  ;;  %v1571_v23 = vcombine.high %v1519_v58, %v1551_v37  ;;  %v1568_v48 = vcombine.low %v1512_v50, %v1544_v13  ;;  %v1570_v33 = vcombine.low %v1519_v58, %v1551_v37 }
 0x10c   : > { %v1573_v41 = vcombine.high %v1528_v49, %v1560_v28  ;;  %v1575_v54 = vcombine.high %v1535_v57, %v1567_v22  ;;  %v1572_v51 = vcombine.low %v1528_v49, %v1560_v28  ;;  %v1574_v30 = vcombine.low %v1535_v57, %v1567_v22 }
 0x10d   : > { %v458_v5 = vpop.permute.xlu1 %457  ;;  %v456_v2 = vpop.permute.xlu0 %455  ;;  %v2717_v29 = vpack.c.bf16 %v1569_v9, %v1433_v56  ;;  %v2725_v46 = vpack.c.bf16 %v1571_v23, %v1435_v21  ;;  %v2719_v19 = vpack.c.bf16 %v1568_v48, %v1432_v61  ;;  %v2727_v44 = vpack.c.bf16 %v1570_v33, %v1434_v0 }
 0x10e   : > { %v3590_v45 = vpack.c.bf16 %v1573_v41, %v1437_v17  ;;  %v3592_v16 = vpack.c.bf16 %v1575_v54, %v1439_v35  ;;  %v3594_v1 = vpack.c.bf16 %v1572_v51, %v1436_v11  ;;  %v3596_v40 = vpack.c.bf16 %v1574_v30, %v1438_v18 }
 0x10f   : > { %2718 = vmatprep.subr.bf16.mxu0 %v2717_v29  ;;  %2726 = vmatprep.subr.bf16.mxu1 %v2725_v46  ;;  %v1712_v22 = vcombine.low %v3086_v53, %v3115_v63  ;;  %v3620_v56 = vsel %vm304_vm2, %v456_v2, %v458_v5  ;;  %v3632_v50 = vsel %vm304_vm2, %v3574_v59, %v3572_v14 }
 0x110   : > { %2720 = vmatpush1.bf16.msra.mxu0 %v2719_v19  ;;  %2728 = vmatpush1.bf16.msra.mxu1 %v2727_v44  ;;  %v1576_v7 = vcombine.low %v3632_v50, %v3620_v56  ;;  %v1736_v17 = vrot.slane %v1728_v38, %v2966_v47 }
 0x111   : > { %v466_v52 = vpop.permute.xlu1 %465  ;;  %v464_v26 = vpop.permute.xlu0 %463  ;;  %v1720_v57 = vrot.slane %v1712_v22, %v2966_v47 }
 0x112   : > { %v3602_v36 = vsel %vm304_vm2, %v464_v26, %v466_v52  ;;  %v1584_v9 = vrot.slane %v1576_v7, %v2966_v47 }
 0x113   : > { %v1592_v61 = vcombine.low %v3617_v32, %v3602_v36  ;;  %v1776_v30 = vcombine.low %v1720_v57, %v1736_v17  ;;  %v1777_v29 = vcombine.high %v1720_v57, %v1736_v17 }
 0x115   : > { %v490_v6 = vpop.permute.xlu1 %489  ;;  %v488_v20 = vpop.permute.xlu0 %487  ;;  %v1600_v11 = vrot.slane %v1592_v61, %v2966_v47 }
 0x116   : > { %v3623_v21 = vsel %vm353_vm3, %v488_v20, %v490_v6  ;;  %v1784_v20 = vrot.slane %v1776_v30, %v3248_v15 }
 0x117   : > { %v1640_v5 = vcombine.low %v1584_v9, %v1600_v11  ;;  %v1641_v46 = vcombine.high %v1584_v9, %v1600_v11 }
 0x119   : > { %v498_v25 = vpop.permute.xlu1 %497  ;;  %v496_v10 = vpop.permute.xlu0 %495 }
 0x11a   : > { %v3605_v60 = vsel %vm353_vm3, %v496_v10, %v498_v25 }
 0x11d   : > { %v506_v42 = vpop.permute.xlu1 %505  ;;  %v504_v13 = vpop.permute.xlu0 %503 }
 0x11e   : > { %v3608_v28 = vsel %vm353_vm3, %v504_v13, %v506_v42  ;;  %v1648_v13 = vrot.slane %v1640_v5, %v3248_v15 }
 0x11f   : > { %v1608_v0 = vcombine.low %v3623_v21, %v3608_v28 }
 0x121   : > { %v514_v34 = vpop.permute.xlu1 %513  ;;  %v512_v37 = vpop.permute.xlu0 %511  ;;  %v1616_v18 = vrot.slane %v1608_v0, %v2966_v47 }
 0x122   : > { %v3599_v3 = vsel %vm353_vm3, %v512_v37, %v514_v34  ;;  %v1791_v34 = vrot.slane %v1777_v29, %v3248_v15  ;;  %v1713_v37 = vcombine.high %v3086_v53, %v3115_v63 }
 0x123   : > { %v1624_v31 = vcombine.low %v3605_v60, %v3599_v3  ;;  %v1625_v63 = vcombine.high %v3605_v60, %v3599_v3  ;;  %v1609_v3 = vcombine.high %v3623_v21, %v3608_v28 }
 0x125   : > { %v603_v27 = vpop.permute.xlu1 %602  ;;  %v601_v55 = vpop.permute.xlu0 %600  ;;  %v1632_v24 = vrot.slane %v1624_v31, %v2966_v47  ;;  %v1623_v29 = vrot.slane %v1609_v3, %v2966_v47 }
 0x126   : > { %v3645_v14 = vsel %vm304_vm2, %v601_v55, %v603_v27  ;;  %v1655_v55 = vrot.slane %v1641_v46, %v3248_v15 }
 0x127   : > { %v1672_v23 = vcombine.low %v1616_v18, %v1632_v24  ;;  %v1673_v41 = vcombine.high %v1616_v18, %v1632_v24 }
 0x129   : > { %v611_v4 = vpop.permute.xlu1 %610  ;;  %v609_v39 = vpop.permute.xlu0 %608  ;;  %v1680_v6 = vrot.slane %v1672_v23, %v3248_v15  ;;  %v1687_v25 = vrot.slane %v1673_v41, %v3248_v15  ;;  %v1727_v23 = vrot.slane %v1713_v37, %v2966_v47  ;;  %v1593_v41 = vcombine.high %v3617_v32, %v3602_v36 }
 0x12a   : > { %v631_v54 = vsel %vm304_vm2, %v609_v39, %v611_v4  ;;  %v1729_v4 = vcombine.high %v3101_v62, %v3131_v8 }
 0x12b   : > { %v1705_v31 = vcombine.high %v1648_v13, %v1680_v6  ;;  %v1707_v0 = vcombine.high %v1655_v55, %v1687_v25  ;;  %v1706_v7 = vcombine.low %v1655_v55, %v1687_v25 }
 0x12d   : > { %v619_v58 = vpop.permute.xlu1 %618  ;;  %v617_v49 = vpop.permute.xlu0 %616 }
 0x12e   : > { %v3640_v35 = vsel %vm304_vm2, %v617_v49, %v619_v58  ;;  %v1704_v58 = vcombine.low %v1648_v13, %v1680_v6 }
 0x12f   : > { %v1744_v48 = vcombine.low %v3645_v14, %v3640_v35  ;;  %v1745_v62 = vcombine.high %v3645_v14, %v3640_v35 }
 0x131   : > { %v627_v59 = vpop.permute.xlu1 %626  ;;  %v625_v33 = vpop.permute.xlu0 %624  ;;  %v1752_v44 = vrot.slane %v1744_v48, %v2966_v47  ;;  %v1743_v48 = vrot.slane %v1729_v4, %v2966_v47  ;;  %v1759_v30 = vrot.slane %v1745_v62, %v2966_v47 }
 0x132   : > { %v635_v51 = vsel %vm304_vm2, %v625_v33, %v627_v59 }
 0x133   : > { %v1760_v2 = vcombine.low %v631_v54, %v635_v51  ;;  %v1761_v61 = vcombine.high %v631_v54, %v635_v51  ;;  %v1577_v54 = vcombine.high %v3632_v50, %v3620_v56  ;;  %v1639_v51 = vrot.slane %v1625_v63, %v2966_v47 }
 0x134   : > { %v1792_v5 = vcombine.low %v1727_v23, %v1743_v48  ;;  %v1793_v56 = vcombine.high %v1727_v23, %v1743_v48 }
 0x135   : > { %v651_v19 = vpop.permute.xlu1 %650  ;;  %v1768_v52 = vrot.slane %v1760_v2, %v2966_v47  ;;  %v649_v26 = vpop.permute.xlu0 %648  ;;  %v1775_v60 = vrot.slane %v1761_v61, %v2966_v47  ;;  %v1607_v2 = vrot.slane %v1593_v41, %v2966_v47  ;;  %v1591_v50 = vrot.slane %v1577_v54, %v2966_v47 }
 0x136   : > { %v677_v35 = vsel %vm353_vm3, %v649_v26, %v651_v19  ;;  %v1688_v26 = vcombine.low %v1623_v29, %v1639_v51  ;;  %v1689_v25 = vcombine.high %v1623_v29, %v1639_v51 }
 0x137   : > { %v1808_v10 = vcombine.low %v1752_v44, %v1768_v52  ;;  %v1809_v42 = vcombine.high %v1752_v44, %v1768_v52  ;;  %v1824_v46 = vcombine.low %v1759_v30, %v1775_v60  ;;  %v1825_v44 = vcombine.high %v1759_v30, %v1775_v60 }
 0x138   : > { %v1656_v13 = vcombine.low %v1591_v50, %v1607_v2  ;;  %v1657_v55 = vcombine.high %v1591_v50, %v1607_v2  ;;  %v1696_v61 = vrot.slane %v1688_v26, %v3248_v15 }
 0x139   : > { %v659_v27 = vpop.permute.xlu1 %658  ;;  %v657_v22 = vpop.permute.xlu0 %656  ;;  %v1816_v39 = vrot.slane %v1808_v10, %v3248_v15  ;;  %v1823_v38 = vrot.slane %v1809_v42, %v3248_v15  ;;  %v1800_v42 = vrot.slane %v1792_v5, %v3248_v15 }
 0x13a   : > { %v679_v28 = vsel %vm353_vm3, %v657_v22, %v659_v27  ;;  %v1832_v27 = vrot.slane %v1824_v46, %v3248_v15  ;;  %v1807_v22 = vrot.slane %v1793_v56, %v3248_v15  ;;  %v1671_v62 = vrot.slane %v1657_v55, %v3248_v15 }
 0x13b   : > { %v1841_v24 = vcombine.high %v1784_v20, %v1816_v39  ;;  %v1843_v49 = vcombine.high %v1791_v34, %v1823_v38  ;;  %v1840_v57 = vcombine.low %v1784_v20, %v1816_v39  ;;  %v1842_v53 = vcombine.low %v1791_v34, %v1823_v38 }
 0x13d   : > { %v667_v8 = vpop.permute.xlu1 %666  ;;  %v665_v17 = vpop.permute.xlu0 %664  ;;  %v2721_v11 = vpack.c.bf16 %v1841_v24, %v1705_v31  ;;  %v2729_v18 = vpack.c.bf16 %v1843_v49, %v1707_v0  ;;  %v2723_v59 = vpack.c.bf16 %v1840_v57, %v1704_v58  ;;  %v2731_v9 = vpack.c.bf16 %v1842_v53, %v1706_v7 }
 0x13e   : > { %v681_v33 = vsel %vm353_vm3, %v665_v17, %v667_v8  ;;  %v1839_v31 = vrot.slane %v1825_v44, %v3248_v15  ;;  %v1703_v58 = vrot.slane %v1689_v25, %v3248_v15  ;;  %v1664_v49 = vrot.slane %v1656_v13, %v3248_v15 }
 0x13f   : > { %2722 = vmatprep.subr.bf16.mxu0 %v2721_v11  ;;  %2730 = vmatprep.subr.bf16.mxu1 %v2729_v18  ;;  %v1848_v36 = vcombine.low %v677_v35, %v681_v33  ;;  %v1849_v10 = vcombine.high %v677_v35, %v681_v33  ;;  %v1845_v57 = vcombine.high %v1800_v42, %v1832_v27 }
 0x140   : > { %2724 = vmatpush1.bf16.msra.mxu0 %v2723_v59  ;;  %2732 = vmatpush1.bf16.msra.mxu1 %v2731_v9  ;;  %v1847_v8 = vcombine.high %v1807_v22, %v1839_v31  ;;  %v1709_v17 = vcombine.high %v1664_v49, %v1696_v61  ;;  %v1844_v18 = vcombine.low %v1800_v42, %v1832_v27 }
 0x141   : > { %v675_v14 = vpop.permute.xlu1 %674  ;;  %v673_v32 = vpop.permute.xlu0 %672  ;;  %v1856_v6 = vrot.slane %v1848_v36, %v2966_v47  ;;  %v1863_v0 = vrot.slane %v1849_v10, %v2966_v47  ;;  %v1846_v59 = vcombine.low %v1807_v22, %v1839_v31  ;;  %v1708_v33 = vcombine.low %v1664_v49, %v1696_v61 }
 0x142   : > { %v683_v21 = vsel %vm353_vm3, %v673_v32, %v675_v14  ;;  %v2737_v11 = vpack.c.bf16 %v1845_v57, %v1709_v17  ;;  %v1710_v41 = vcombine.low %v1671_v62, %v1703_v58 }
 0x143   : > { %v1864_v19 = vcombine.low %v679_v28, %v683_v21  ;;  %v1865_v52 = vcombine.high %v679_v28, %v683_v21  ;;  %v2739_v3 = vpack.c.bf16 %v1844_v18, %v1708_v33 }
 0x144   : > { %v2747_v60 = vpack.c.bf16 %v1846_v59, %v1710_v41 }
 0x145   : > { %v1872_v20 = vrot.slane %v1864_v19, %v2966_v47  ;;  %v1879_v4 = vrot.slane %v1865_v52, %v2966_v47  ;;  %v1711_v47 = vcombine.high %v1671_v62, %v1703_v58 }
 0x147   : > { %v1880_v34 = vcombine.low %v1856_v6, %v1872_v20  ;;  %v1881_v37 = vcombine.high %v1856_v6, %v1872_v20  ;;  %v1896_v53 = vcombine.low %v1863_v0, %v1879_v4  ;;  %v1897_v63 = vcombine.high %v1863_v0, %v1879_v4 }
 0x148   : > { %v2745_v48 = vpack.c.bf16 %v1847_v8, %v1711_v47 }
 0x149   : > { %v1888_v39 = vrot.slane %v1880_v34, %v3248_v15  ;;  %v1895_v38 = vrot.slane %v1881_v37, %v3248_v15  ;;  %v1904_v9 = vrot.slane %v1896_v53, %v3248_v15  ;;  %v1911_v23 = vrot.slane %v1897_v63, %v3248_v15 }
 0x14b   : > { %v1912_v7 = vcombine.high %v1888_v39, %v2812_v43  ;;  %v1913_v24 = vcombine.high %v1895_v38, %v2812_v43  ;;  %v1914_v15 = vcombine.high %v1904_v9, %v2812_v43 }
 0x14d   : > { %2670 = vmatprep.subr.msk.mxu0 %vm1927_vm4, %v1912_v7  ;;  %2673 = vmatprep.subr.msk.mxu1 %vm1927_vm4, %v1913_v24 }
 0x14e   : > { %2671 = vmatpush1.msk.msra.mxu0 %vm1927_vm4, %v1888_v39  ;;  %2674 = vmatpush1.msk.msra.mxu1 %vm1927_vm4, %v1895_v38 }
 0x14f   : > { %2672 = vmatmul.mubr.msk.f32.vlgmr.msra.gmra.mrb[4].mxu0 %vm1923_vm5, %v3484_v12  ;;  %2675 = vmatmul.mubr.msk.f32.vlgmr.msra.gmra.mrb[4].mxu1 %vm1923_vm5, %v3484_v12 }
 0x150   : > { %2734 = vmatprep.subr.bf16.mxu0 %v3590_v45  ;;  %2742 = vmatprep.subr.bf16.mxu1 %v3592_v16  ;;  %v1915_v45 = vcombine.high %v1911_v23, %v2812_v43 }
 0x151   : > { %2736 = vmatpush1.bf16.msra.mxu0 %v3594_v1  ;;  %2744 = vmatpush1.bf16.msra.mxu1 %v3596_v40 }
 0x152   : > { %2738 = vmatprep.subr.bf16.mxu0 %v2737_v11  ;;  %2746 = vmatprep.subr.bf16.mxu1 %v2745_v48  ;;  %v1921_v16 = vpop.permute.xlu0 %1920 }
 0x153   : > { %2466 = vmatprep.mubr.f32.mxu0 %v2812_v43  ;;  %2537 = vmatprep.mubr.f32.mxu1 %v2812_v43 }
 0x155   : > { %2740 = vmatpush1.bf16.msra.mxu0 %v2739_v3  ;;  %2748 = vmatpush1.bf16.msra.mxu1 %v2747_v60 }
 0x156   : > { %2676 = vmatprep.subr.msk.mxu0 %vm1927_vm4, %v1914_v15  ;;  %2679 = vmatprep.subr.msk.mxu1 %vm1927_vm4, %v1915_v45 }
 0x159   : > { %2677 = vmatpush1.msk.msra.mxu0 %vm1927_vm4, %v1904_v9  ;;  %2680 = vmatpush1.msk.msra.mxu1 %vm1927_vm4, %v1911_v23 }
 0x15a   : > { %2678 = vmatmul.mubr.msk.f32.vlgmr.msra.gmra.mrb[6].mxu0 %vm1923_vm5, %v3484_v12  ;;  %2681 = vmatmul.mubr.msk.f32.vlgmr.msra.gmra.mrb[6].mxu1 %vm1923_vm5, %v3484_v12 }
 0x1c3   : > { %v2042_v1 = vpop.f32.mrb[0].mxu0  ;;  %v2113_v43 = vpop.f32.mrb[0].mxu1 }
 0x1c4   : > { %v2043_v40 = vadd.f32 %v2042_v1, %v1921_v16  ;;  %v2114_v35 = vadd.f32 %v2113_v43, %v1921_v16  ;;  %v2044_v14 = vpop.f32.mrb[1].mxu0  ;;  %v2115_v54 = vpop.f32.mrb[1].mxu1 }
 0x1c5   : > { %v2045_v12 = vadd.f32 %v2044_v14, %v1921_v16  ;;  %v2116_v51 = vadd.f32 %v2115_v54, %v1921_v16 }
 0x1c6   : > { %2544 = vst [vmem:[%s3734_s29] sm:$0xff] %v2043_v40  ;;  %2546 = vst [vmem:[%s3734_s29 + $0x10] sm:$0xff] %v2114_v35 }
 0x1c7   : > { %2545 = vst [vmem:[%s3734_s29 + $0x8] sm:$0xff] %v2045_v12  ;;  %2547 = vst [vmem:[%s3734_s29 + $0x18] sm:$0xff] %v2116_v51 }
 0x1cd   : > { %v2184_v30 = vpop.f32.mrb[2].mxu0  ;;  %v2255_v36 = vpop.f32.mrb[2].mxu1 }
 0x1ce   : > { %v2185_v32 = vadd.f32 %v2184_v30, %v1921_v16  ;;  %v2256_v28 = vadd.f32 %v2255_v36, %v1921_v16  ;;  %v2186_v21 = vpop.f32.mrb[3].mxu0  ;;  %v2257_v5 = vpop.f32.mrb[3].mxu1 }
 0x1cf   : > { %v2187_v2 = vadd.f32 %v2186_v21, %v1921_v16  ;;  %v2258_v29 = vadd.f32 %v2257_v5, %v1921_v16 }
 0x1d0   : > { %2548 = vst [vmem:[%s3734_s29 + $0x20] sm:$0xff] %v2185_v32  ;;  %2550 = vst [vmem:[%s3734_s29 + $0x30] sm:$0xff] %v2256_v28 }
 0x1d1   : > { %2549 = vst [vmem:[%s3734_s29 + $0x28] sm:$0xff] %v2187_v2  ;;  %2551 = vst [vmem:[%s3734_s29 + $0x38] sm:$0xff] %v2258_v29 }
 0x222   : > { %v2326_v46 = vpop.f32.mrb[4].mxu0  ;;  %v2397_v19 = vpop.f32.mrb[4].mxu1 }
 0x223   : > { %v2327_v44 = vadd.f32 %v2326_v46, %v1921_v16  ;;  %v2398_v52 = vadd.f32 %v2397_v19, %v1921_v16  ;;  %v2328_v56 = vpop.f32.mrb[5].mxu0  ;;  %v2399_v50 = vpop.f32.mrb[5].mxu1 }
 0x224   : > { %v2329_v26 = vadd.f32 %v2328_v56, %v1921_v16  ;;  %v2400_v6 = vadd.f32 %v2399_v50, %v1921_v16 }
 0x225   : > { %2552 = vst [vmem:[%s3734_s29 + $0x40] sm:$0xff] %v2327_v44  ;;  %2554 = vst [vmem:[%s3734_s29 + $0x50] sm:$0xff] %v2398_v52 }
 0x226   : > { %2553 = vst [vmem:[%s3734_s29 + $0x48] sm:$0xff] %v2329_v26  ;;  %2555 = vst [vmem:[%s3734_s29 + $0x58] sm:$0xff] %v2400_v6 }
 0x22d   : > { %v2468_v20 = vpop.f32.mrb[6].mxu0  ;;  %v2539_v25 = vpop.f32.mrb[6].mxu1 }
 0x22e   : > { %v2469_v10 = vadd.f32 %v2468_v20, %v1921_v16  ;;  %v2540_v42 = vadd.f32 %v2539_v25, %v1921_v16  ;;  %v2470_v13 = vpop.f32.mrb[7].mxu0  ;;  %v2541_v34 = vpop.f32.mrb[7].mxu1 }
 0x22f   : > { %v2471_v37 = vadd.f32 %v2470_v13, %v1921_v16  ;;  %v2542_v27 = vadd.f32 %v2541_v34, %v1921_v16 }
 0x230   : > { %2556 = vst [vmem:[%s3734_s29 + $0x60] sm:$0xff] %v2469_v10  ;;  %2558 = vst [vmem:[%s3734_s29 + $0x70] sm:$0xff] %v2540_v42 }
 0x231   : > { %2557 = vst [vmem:[%s3734_s29 + $0x68] sm:$0xff] %v2471_v37  ;;  %2559 = vst [vmem:[%s3734_s29 + $0x78] sm:$0xff] %v2542_v27 }
 0x232 PF: > { %s13_s14 = sadd.s32 1, %s2807_s14   ;;  %s3765_s12 = smov %s2803_s13 }
 0x233   : > { %p10_p5 = scmp.ge.s32.totalorder %s13_s14, 4   ;;  %s3766_s13 = smov %s3768_s15 }
 0x235   :  { %12 = sbr.rel (!%p10_p5) target bundleno = 2 (0x2), region = 62 }

</bundles_post_ra>
